<compile_context>
chip_gen: v7x
topology: tpu7x:2x2x1
jax: 0.10.0
libtpu: 0.0.40
codegen_flags: <defaults>
</compile_context>

<pallas_src>
import math

import jax
import jax.numpy as jnp
from jax import lax
from jax.experimental import pallas as pl
from jax.experimental.pallas import tpu as pltpu

_INV_SQRT2 = 0.7071067811865476


# ---------------------------------------------------------------------------
# Kernels
# ---------------------------------------------------------------------------
def _gelu(h, approximate):
    if approximate:
        # tanh GELU -> EUP (own bundle slot); frees the VPU on v5e/v6e.
        return jax.nn.gelu(h, approximate=True)
    # exact GELU (PyTorch nn.GELU default): 0.5*x*(1 + erf(x/sqrt(2)))
    return 0.5 * h * (1.0 + lax.erf(h * jnp.float32(_INV_SQRT2)))


def _make_mlp_kernel_single(approximate_gelu):
    """num_k == 1 fast path: whole hidden dim resident, no accumulator."""
    def kernel(x_ref, w1_ref, b1_ref, w2_ref, b2_ref, o_ref):
        # fc1: (tm, D) @ (D, H) on the MXU, f32 accumulation.
        h = jnp.dot(x_ref[...], w1_ref[...], preferred_element_type=jnp.float32)
        h = h + b1_ref[...]                               # (1, H) broadcast, f32
        h = _gelu(h, approximate_gelu)
        # dropout(p=0.0) is the identity — nothing to do.
        # fc2: (tm, H) @ (H, O); bias add and cast on the way out.
        o = jnp.dot(h.astype(w2_ref.dtype), w2_ref[...],
                    preferred_element_type=jnp.float32)
        o_ref[...] = (o + b2_ref[...]).astype(o_ref.dtype)
    return kernel


def _make_mlp_kernel_multi(approximate_gelu):
    """num_k > 1 fallback: hidden dim split, f32 accumulator across k."""
    def kernel(x_ref, w1_ref, b1_ref, w2_ref, b2_ref, o_ref, acc_ref):
        k = pl.program_id(1)

        @pl.when(k == 0)
        def _():
            # fold the fc2 bias into the accumulator init (saves a finalize add)
            acc_ref[...] = jnp.broadcast_to(b2_ref[...], acc_ref.shape)

        h = jnp.dot(x_ref[...], w1_ref[...], preferred_element_type=jnp.float32)
        h = h + b1_ref[...]                               # (1, tH) broadcast
        h = _gelu(h, approximate_gelu)
        acc_ref[...] += jnp.dot(h.astype(w2_ref.dtype), w2_ref[...],
                                preferred_element_type=jnp.float32)

        @pl.when(k == pl.num_programs(1) - 1)
        def _():
            o_ref[...] = acc_ref[...].astype(o_ref.dtype)
    return kernel


# ---------------------------------------------------------------------------
# Tiling / budget helpers
# ---------------------------------------------------------------------------
def _cdiv(a, b):
    return (a + b - 1) // b


def _round_up(x, m):
    return _cdiv(x, m) * m


def _vmem_budget_bytes():
    """Generation-aware VMEM budget: ~78% of physical, with fixed headroom."""
    cap = None
    try:
        info = pltpu.get_tpu_info()
        for attr in ("vmem_capacity_bytes", "vmem_size_bytes", "vmem_bytes"):
            v = getattr(info, attr, None)
            if v:
                cap = int(v)
                break
    except Exception:
        cap = None
    if not cap:
        cap = 64 << 20                      # conservative (v7x-sized) fallback
    return max(32 << 20, min(int(cap * 0.78), cap - (12 << 20)))


def _vmem_bytes(tile_m, tile_h, D, H, O, csz, osz, num_k):
    """Estimated VMEM footprint of one grid step (incl. the f32 h tile)."""
    wbuf = 1 if num_k == 1 else 2           # single-buffered when index constant
    x_b = 2 * tile_m * D * csz              # double-buffered x tiles
    o_b = 2 * tile_m * O * osz              # double-buffered out tiles
    w_b = wbuf * (D * tile_h + tile_h * O) * csz
    b_b = wbuf * tile_h * 4 + O * 4
    h_b = tile_m * tile_h * (4 + csz)       # f32 fc1 intermediate + bf16 recast
    acc_b = 0 if num_k == 1 else tile_m * O * 4
    return x_b + o_b + w_b + b_b + h_b + acc_b


def _choose_tiles(M, D, H, O, csz, osz, budget, tile_m=None, tile_h=None):
    target_row_tiles = 4                    # >= 2 tiles per TC on dual-TC chips

    if tile_m is None:
        tm = max(16, min(512, _round_up(_cdiv(M, target_row_tiles), 16)))
    else:
        tm = max(16, _round_up(int(tile_m), 16))

    def shrink(t):
        return max(16, ((t // 2) // 16) * 16)

    if tile_h is not None:
        th = int(tile_h)
        assert H % th == 0 and (th == H or th % 128 == 0), (
            "tile_h must divide H and be a multiple of 128 (or equal H)")
        while tm > 16 and _vmem_bytes(tm, th, D, H, O, csz, osz, H // th) > budget:
            tm = shrink(tm)
        return tm, th

    # candidate hidden chunks, largest first: prefer full residency (th == H)
    cands = [H]
    c = (H // 128) * 128
    while c >= 128:
        if c < H and H % c == 0:
            cands.append(c)
        c -= 128

    while True:
        for th in cands:
            if _vmem_bytes(tm, th, D, H, O, csz, osz, H // th) <= budget:
                return tm, th
        if tm <= 16:
            return 16, cands[-1]
        tm = shrink(tm)


def _spec(shape, index_map, single_buffer=False):
    """BlockSpec; constant-index operands are single-buffered when supported."""
    if single_buffer and hasattr(pl, "Buffered"):
        try:
            return pl.BlockSpec(shape, index_map, pipeline_mode=pl.Buffered(1))
        except Exception:
            pass
    return pl.BlockSpec(shape, index_map)


# ---------------------------------------------------------------------------
# Wrapper
# ---------------------------------------------------------------------------
def mlp_forward(x, w1, b1, w2, b2, *, tile_m=None, tile_h=None,
                compute_dtype=jnp.bfloat16, out_dtype=None,
                approximate_gelu=False):
    """x: (B, N, D).  w1: (D, H), b1: (H,), w2: (H, O), b2: (O,).

    Computes fc2(gelu(fc1(x))) with dropout(p=0) elided, matching the PyTorch
    `Mlp` module.  MXU matmuls run in `compute_dtype` (bf16 by default) with
    f32 accumulation; bias adds and GELU run in f32.
    """
    B, N, D = x.shape
    H = w1.shape[1]
    O = w2.shape[1]
    M = B * N

    cd = jnp.dtype(compute_dtype)
    od = jnp.dtype(out_dtype) if out_dtype is not None else jnp.dtype(x.dtype)
    csz, osz = cd.itemsize, od.itemsize

    budget = _vmem_budget_bytes()
    tile_m, tile_h = _choose_tiles(M, D, H, O, csz, osz, budget, tile_m, tile_h)
    num_m = _cdiv(M, tile_m)
    num_k = H // tile_h

    # ---- operand prep (no padding: ragged last row-tile handled by Pallas) --
    x2d = x.reshape(M, D).astype(cd)
    w1c = w1.astype(cd)
    w2c = w2.astype(cd)
    b1_2d = b1.reshape(1, H).astype(jnp.float32)
    b2_2d = b2.reshape(1, O).astype(jnp.float32)

    cost = pl.CostEstimate(
        flops=2 * M * (D * H + H * O),
        transcendentals=M * H,
        bytes_accessed=(M * D * csz
                        + (D * H + H * O) * csz * (1 if num_k == 1 else num_m)
                        + (H + O) * 4 + M * O * osz),
    )

    if num_k == 1:
        # Weights fully VMEM-resident, fetched once; no accumulator scratch.
        grid = (num_m,)
        in_specs = [
            _spec((tile_m, D), lambda i: (i, 0)),
            _spec((D, H), lambda i: (0, 0), single_buffer=True),
            _spec((1, H), lambda i: (0, 0), single_buffer=True),
            _spec((H, O), lambda i: (0, 0), single_buffer=True),
            _spec((1, O), lambda i: (0, 0), single_buffer=True),
        ]
        out_specs = pl.BlockSpec((tile_m, O), lambda i: (i, 0))
        scratch = []
        kernel = _make_mlp_kernel_single(approximate_gelu)
        dim_sem = ("parallel",)
    else:
        # Fallback: hidden dim split, reduction axis last, f32 accumulator.
        grid = (num_m, num_k)
        in_specs = [
            _spec((tile_m, D), lambda i, k: (i, 0)),
            _spec((D, tile_h), lambda i, k: (0, k)),
            _spec((1, tile_h), lambda i, k: (0, k)),
            _spec((tile_h, O), lambda i, k: (k, 0)),
            _spec((1, O), lambda i, k: (0, 0), single_buffer=True),
        ]
        out_specs = pl.BlockSpec((tile_m, O), lambda i, k: (i, 0))
        scratch = [pltpu.VMEM((tile_m, O), jnp.float32)]
        kernel = _make_mlp_kernel_multi(approximate_gelu)
        dim_sem = ("parallel", "arbitrary")

    grid_spec = pltpu.PrefetchScalarGridSpec(
        num_scalar_prefetch=0,
        grid=grid,
        in_specs=in_specs,
        out_specs=out_specs,
        scratch_shapes=scratch,
    )

    out2d = pl.pallas_call(
        kernel,
        out_shape=jax.ShapeDtypeStruct((M, O), od),
        grid_spec=grid_spec,
        compiler_params=pltpu.CompilerParams(
            dimension_semantics=dim_sem,
            vmem_limit_bytes=int(budget),
        ),
        cost_estimate=cost,
    )(x2d, w1c, b1_2d, w2c, b2_2d)

    return out2d.reshape(B, N, O)


# ---------------------------------------------------------------------------
# Reference / params
# ---------------------------------------------------------------------------
def init_mlp_params(key, in_features, hidden_features=None, out_features=None,
                    dtype=jnp.float32):
    """Deterministic synthetic init matching nn.Linear shapes.

    PyTorch stores Linear weights as (out, in); we store the transpose
    (in, out) so the kernel can do x @ W directly.
    """
    out_features = out_features or in_features
    hidden_features = hidden_features or in_features
    k1, k2, k3, k4 = jax.random.split(key, 4)
    bound1 = 1.0 / math.sqrt(in_features)
    bound2 = 1.0 / math.sqrt(hidden_features)
    w1 = jax.random.uniform(k1, (in_features, hidden_features), dtype,
                            minval=-bound1, maxval=bound1)
    b1 = jax.random.uniform(k2, (hidden_features,), dtype,
                            minval=-bound1, maxval=bound1)
    w2 = jax.random.uniform(k3, (hidden_features, out_features), dtype,
                            minval=-bound2, maxval=bound2)
    b2 = jax.random.uniform(k4, (out_features,), dtype,
                            minval=-bound2, maxval=bound2)
    return w1, b1, w2, b2


def mlp_reference(x, w1, b1, w2, b2, *, compute_dtype=jnp.bfloat16,
                  approximate_gelu=False):
    """Pure-JAX reference with the same precision policy as the kernel."""
    B, N, D = x.shape
    cd = jnp.dtype(compute_dtype)
    x2d = x.reshape(B * N, D).astype(cd)
    h = jnp.dot(x2d, w1.astype(cd), preferred_element_type=jnp.float32)
    h = h + b1.astype(jnp.float32)
    h = _gelu(h, approximate_gelu)
    o = jnp.dot(h.astype(cd), w2.astype(cd), preferred_element_type=jnp.float32)
    o = o + b2.astype(jnp.float32)
    return o.reshape(B, N, -1).astype(x.dtype)


if __name__ == "__main__":
    key = jax.random.PRNGKey(0)
    kx, kp, kx2 = jax.random.split(key, 3)

    # Shapes implied by GlobalTransformerBlock: x is (B, L=H*W, C=dim),
    # hidden = dim * mlp_ratio.  Lane-dense choices (multiples of 128).
    B, res, D = 2, (16, 16), 128
    L = res[0] * res[1]                      # 256 tokens
    Hdim = 4 * D                             # mlp_ratio = 4 -> 512
    x = jax.random.normal(kx, (B, L, D), dtype=jnp.float32)
    w1, b1, w2, b2 = init_mlp_params(kp, in_features=D,
                                     hidden_features=Hdim, out_features=D)
    ref = mlp_reference(x, w1, b1, w2, b2)

    # 1) Default path: weights fully VMEM-resident (num_k == 1), auto tile_m
    #    -> 4 row tiles (dual-TC friendly), accumulator-free fast kernel.
    out = jax.block_until_ready(mlp_forward(x, w1, b1, w2, b2))
    assert out.shape == ref.shape == (B, L, D)
    err = jnp.max(jnp.abs(out - ref))
    assert jnp.allclose(out, ref, atol=2e-3, rtol=2e-3), f"max abs err {err}"

    # 2) Forced hidden-dim split (num_k = 2): exercises the accumulator /
    #    pl.when reduction fallback path with b2 folded into the init.
    out_k = jax.block_until_ready(mlp_forward(x, w1, b1, w2, b2,
                                              tile_m=128, tile_h=256))
    err_k = jnp.max(jnp.abs(out_k - ref))
    assert jnp.allclose(out_k, ref, atol=2e-3, rtol=2e-3), f"max abs err {err_k}"

    # 3) Ragged row count (M = 81, not a multiple of the row tile): exercises
    #    the partial trailing block (no jnp.pad copy) and small-M tile pick.
    B2, res2 = 1, (9, 9)
    L2 = res2[0] * res2[1]
    x2 = jax.random.normal(kx2, (B2, L2, D), dtype=jnp.float32)
    out2 = jax.block_until_ready(mlp_forward(x2, w1, b1, w2, b2))
    ref2 = mlp_reference(x2, w1, b1, w2, b2)
    assert out2.shape == ref2.shape == (B2, L2, D)
    err2 = jnp.max(jnp.abs(out2 - ref2))
    assert jnp.allclose(out2, ref2, atol=2e-3, rtol=2e-3), f"max abs err {err2}"

    print("KERNEL_OK")
</pallas_src>

<mosaic_0001>
module attributes {stable_mosaic.version = 11 : i64} {
  func.func @kernel(%arg0: i32, %arg1: memref<128x128xbf16, #tpu.memory_space<vmem>>, %arg2: memref<128x512xbf16, #tpu.memory_space<vmem>>, %arg3: memref<1x512xf32, #tpu.memory_space<vmem>>, %arg4: memref<512x128xbf16, #tpu.memory_space<vmem>>, %arg5: memref<1x128xf32, #tpu.memory_space<vmem>>, %arg6: memref<128x128xf32, #tpu.memory_space<vmem>>) attributes {dimension_semantics = [#tpu.dimension_semantics<parallel>], iteration_bounds = array<i64: 4>, scalar_prefetch = 0 : i64, scratch_operands = 0 : i64, tpu.core_type = #tpu.core_type<tc>, window_params = [{transform_indices = @transform_0, window_bounds = array<i64: 128, 128>}, {pipeline_mode = #tpu.pipeline_mode<synchronous>, transform_indices = @transform_1, window_bounds = array<i64: 128, 512>}, {pipeline_mode = #tpu.pipeline_mode<synchronous>, transform_indices = @transform_2, window_bounds = array<i64: 1, 512>}, {pipeline_mode = #tpu.pipeline_mode<synchronous>, transform_indices = @transform_3, window_bounds = array<i64: 512, 128>}, {pipeline_mode = #tpu.pipeline_mode<synchronous>, transform_indices = @transform_4, window_bounds = array<i64: 1, 128>}, {transform_indices = @transform_5, window_bounds = array<i64: 128, 128>}]} {
    %c0 = arith.constant 0 : index
    %c0_0 = arith.constant 0 : index
    %0 = vector.load %arg1[%c0, %c0_0] : memref<128x128xbf16, #tpu.memory_space<vmem>>, vector<128x128xbf16>
    %c0_1 = arith.constant 0 : index
    %c0_2 = arith.constant 0 : index
    %1 = vector.load %arg2[%c0_1, %c0_2] : memref<128x512xbf16, #tpu.memory_space<vmem>>, vector<128x512xbf16>
    %cst = arith.constant dense<0.000000e+00> : vector<128x512xf32>
    %2 = tpu.matmul %0, %1, %cst {dimension_numbers = #tpu.dot_dimension_numbers<[1], [0], [0], [1], [0, 0, 1, 1], [], []>} : vector<128x128xbf16>, vector<128x512xbf16>, vector<128x512xf32> -> vector<128x512xf32>
    %c0_3 = arith.constant 0 : index
    %c0_4 = arith.constant 0 : index
    %3 = vector.load %arg3[%c0_3, %c0_4] : memref<1x512xf32, #tpu.memory_space<vmem>>, vector<1x512xf32>
    %4 = vector.broadcast %3 : vector<1x512xf32> to vector<128x512xf32>
    %5 = arith.addf %2, %4 : vector<128x512xf32>
    %cst_5 = arith.constant 5.000000e-01 : f32
    %6 = vector.broadcast %cst_5 : f32 to vector<128x512xf32>
    %7 = arith.mulf %6, %5 : vector<128x512xf32>
    %cst_6 = arith.constant 0.707106769 : f32
    %8 = vector.broadcast %cst_6 : f32 to vector<128x512xf32>
    %9 = arith.mulf %5, %8 : vector<128x512xf32>
    %10 = math.erf %9 : vector<128x512xf32>
    %cst_7 = arith.constant 1.000000e+00 : f32
    %11 = vector.broadcast %cst_7 : f32 to vector<128x512xf32>
    %12 = arith.addf %11, %10 : vector<128x512xf32>
    %13 = arith.mulf %7, %12 : vector<128x512xf32>
    %14 = arith.truncf %13 : vector<128x512xf32> to vector<128x512xbf16>
    %c0_8 = arith.constant 0 : index
    %c0_9 = arith.constant 0 : index
    %15 = vector.load %arg4[%c0_8, %c0_9] : memref<512x128xbf16, #tpu.memory_space<vmem>>, vector<512x128xbf16>
    %cst_10 = arith.constant dense<0.000000e+00> : vector<128x128xf32>
    %16 = tpu.matmul %14, %15, %cst_10 {dimension_numbers = #tpu.dot_dimension_numbers<[1], [0], [0], [1], [0, 0, 1, 1], [], []>} : vector<128x512xbf16>, vector<512x128xbf16>, vector<128x128xf32> -> vector<128x128xf32>
    %c0_11 = arith.constant 0 : index
    %c0_12 = arith.constant 0 : index
    %17 = vector.load %arg5[%c0_11, %c0_12] : memref<1x128xf32, #tpu.memory_space<vmem>>, vector<1x128xf32>
    %18 = vector.broadcast %17 : vector<1x128xf32> to vector<128x128xf32>
    %19 = arith.addf %16, %18 : vector<128x128xf32>
    %c0_13 = arith.constant 0 : index
    %c0_14 = arith.constant 0 : index
    %20 = vector.load %arg6[%c0_13, %c0_14] : memref<128x128xf32, #tpu.memory_space<vmem>>, vector<128x128xf32>
    tpu.vector_store %arg6[%c0_13, %c0_14], %19 {strides = array<i32>} : memref<128x128xf32, #tpu.memory_space<vmem>>, vector<128x128xf32>,
    return
  }
  func.func @transform_0(%arg0: i32) -> (i32, i32) {
    %c0_i32 = arith.constant 0 : i32
    %c0_i32_0 = arith.constant 0 : i32
    return %arg0, %c0_i32 : i32, i32
  }
  func.func @transform_1(%arg0: i32) -> (i32, i32) {
    %c0_i32 = arith.constant 0 : i32
    %c0_i32_0 = arith.constant 0 : i32
    %c0_i32_1 = arith.constant 0 : i32
    return %c0_i32, %c0_i32_0 : i32, i32
  }
  func.func @transform_2(%arg0: i32) -> (i32, i32) {
    %c0_i32 = arith.constant 0 : i32
    %c0_i32_0 = arith.constant 0 : i32
    %c0_i32_1 = arith.constant 0 : i32
    return %c0_i32, %c0_i32_0 : i32, i32
  }
  func.func @transform_3(%arg0: i32) -> (i32, i32) {
    %c0_i32 = arith.constant 0 : i32
    %c0_i32_0 = arith.constant 0 : i32
    %c0_i32_1 = arith.constant 0 : i32
    return %c0_i32, %c0_i32_0 : i32, i32
  }
  func.func @transform_4(%arg0: i32) -> (i32, i32) {
    %c0_i32 = arith.constant 0 : i32
    %c0_i32_0 = arith.constant 0 : i32
    %c0_i32_1 = arith.constant 0 : i32
    return %c0_i32, %c0_i32_0 : i32, i32
  }
  func.func @transform_5(%arg0: i32) -> (i32, i32) {
    %c0_i32 = arith.constant 0 : i32
    %c0_i32_0 = arith.constant 0 : i32
    return %arg0, %c0_i32 : i32, i32
  }
}

</mosaic_0001>

<bundles_post_ra>
// kernel: tpu_custom_call.1
= control target key start
LH: loop header
LB: loop body
LE: loop exit
PB: predicated region body
PF: predicated region fallthrough
CT: control target
= control target key end

     0   :  { %10 = vsyncpa [#allocation3], 0  ;;  %s3215_s0 = inlined_call_operand.hbm [shape: bf16[512,128], index: 0, kind: input, shape index: {}]   ;;  %s3216_s1 = inlined_call_operand.hbm [shape: bf16[128,512], index: 1, kind: input, shape index: {}]   ;;  %s3217_s2 = inlined_call_operand.vmem [shape: f32[1,512], index: 2, kind: input, shape index: {}]   ;;  %s3218_s3 = inlined_call_operand.hbm [shape: bf16[512,128], index: 3, kind: input, shape index: {}]   ;;  %s3219_s4 = inlined_call_operand.vmem [shape: f32[1,128], index: 4, kind: input, shape index: {}]   ;;  %s3220_s5 = inlined_call_operand.hbm [shape: f32[512,128], index: 5, kind: output, shape index: {}]  }
   0x1   :  { %12 = vsyncpa [#allocation3 + $0x1], 0 }
   0x2   :  { %13 = vsyncpa [#allocation6], 0 }
   0x3   :  { %14 = vsyncpa [#allocation4], 0 }
   0x4   :  { %16 = vsyncpa [#allocation4 + $0x1], 0  ;;  %s2420_s18 = smov 0   ;;  %s2422_s19 = smov 0  }
   0x5   :  { %s2424_s20 = smov 0   ;;  %s2426_s21 = smov 0  }
   0x6 LB: > { %s2441_s22 = sadd.s32 4294967295, %s2377_s21   ;;  %s1710_s23 = sadd.s32 4294967294, %s2377_s21   ;;  %s2377_s21 = sphi %s2426_s21, %s3249_s21   ;;  %s2373_s20 = sphi %s2424_s20, %s3248_s20   ;;  %s2369_s19 = sphi %s2422_s19, %s3247_s19   ;;  %s2365_s18 = sphi %s2420_s18, %s3246_s18  }
   0x7   : > { %p42_p0 = scmp.ne.s32.totalorder %s2369_s19, %s2365_s18  ;;  %p3221_p1 = scmp.eq.s32.totalorder %s2441_s22, 0 }
   0x8   : > { %p156_p3 = scmp.eq.s32.totalorder %s1710_s23, 3  ;;  %p1711_p5 = scmp.ge.s32.totalorder %s2377_s21, 1 }
   0x9   : > { %p2450_p4 = por %p3221_p1, %p42_p0  ;;  %p163_p7 = scmp.lt.s32.totalorder %s2377_s21, 5 }
   0xa   : > { %p2455_p6 = por %p156_p3, %p42_p0  ;;  %s2379_s27 = smov [#allocation5]  }
   0xb   : > { %s3224_s24 = scalar_select %p2450_p4, 1, 0 }
   0xc   : > { %s3225_s25 = scalar_select %p2455_p6, 1, 0 }
   0xd   : > { %p2460_p8 = pnand %p1711_p5, %p163_p7  ;;  %s175_s28 = sshll.u32 %s2379_s27, 4  ;;  %s176_s28 = int_to_ptr.vmem [resolvable:$true] %s175_s28 }
   0xe   : > { %s2380_s30 = smov [#allocation7]   ;;  %s2221_s9 = scalar_lea.hbm %s3216_s1, 4096 }
   0xf   : > { %s3226_s26 = scalar_select %p2460_p8, 1, 0 }
  0x10   : > { %p1943_p9 = pneg %p2460_p8  ;;  %s191_s6 = sshll.u32 %s2380_s30, 4  ;;  %s2472_s6 = int_to_ptr.vmem [resolvable:$true] %s191_s6 }
  0x11   : > { %p2222_p11 = scmp.ne.s32.totalorder %s3216_s1, %s2221_s9  ;;  %p2228_p3 = scmp.lt.u32.totalorder %s2221_s9, %s3216_s1 }
  0x12   : > { %p2468_p10 = pnand %p1943_p9, %p3221_p1 }
  0x14   : > { %p2223_p12 = pneg %p2468_p10 }
  0x16   : > { %p2224_p13 = pnand %p2223_p12, %p2222_p11 }
  0x18   : > { %p2225_p0 = pneg %p2224_p13 }
  0x1a   : > { %p2230_p5 = pnand %p2228_p3, %p2225_p0 }
  0x1c   : > { %2233 = shalt.err (!%p2230_p5)
}
  0x1d   : > { %s2234_s14 = scalar_lea.vmem %s176_s28, 4096  ;;  %p2242_p2 = scmp.lt.s32.totalorder %s176_s28, %s176_s28 }
  0x1e   : > { %p2235_p7 = scmp.ne.s32.totalorder %s176_s28, %s2234_s14  ;;  %p2243_p6 = scmp.lt.s32.totalorder %s2234_s14, %s2234_s14 }
  0x20   : > { %p2237_p9 = pnand %p2235_p7, %p2223_p12  ;;  %p2244_p4 = por %p2243_p6, %p2242_p2 }
  0x22   : > { %p2238_p1 = pneg %p2237_p9 }
  0x24   : > { %p2245_p8 = pnand %p2244_p4, %p2238_p1 }
  0x26   : > { %2248 = shalt.err (!%p2245_p8)
}
  0x27   : > { %s2381_s15 = smov 256   ;;  %s2382_s16 = smov 16  }
  0x28   : > { %1946 = dma.hbm_to_vmem [thread:$0]  (!%p2468_p10), %s3216_s1, 4096, %s176_s28, [#allocation6], %s2381_s15, %s2381_s15, %s2382_s16  }
  0x29   : > { %s2249_s7 = scalar_lea.hbm %s3218_s3, 4096 }
  0x2a   : > { %p2250_p11 = scmp.ne.s32.totalorder %s3218_s3, %s2249_s7  ;;  %p2256_p4 = scmp.lt.u32.totalorder %s2249_s7, %s3218_s3 }
  0x2c   : > { %p2252_p1 = pnand %p2250_p11, %p2223_p12 }
  0x2e   : > { %p2253_p2 = pneg %p2252_p1 }
  0x30   : > { %p2258_p6 = pnand %p2256_p4, %p2253_p2 }
  0x32   : > { %2261 = shalt.err (!%p2258_p6)
}
  0x33   : > { %s2262_s28 = scalar_lea.vmem %s2472_s6, 4096  ;;  %p2270_p3 = scmp.lt.s32.totalorder %s2472_s6, %s2472_s6 }
  0x34   : > { %p2263_p8 = scmp.ne.s32.totalorder %s2472_s6, %s2262_s28  ;;  %p2271_p5 = scmp.lt.s32.totalorder %s2262_s28, %s2262_s28 }
  0x36   : > { %p2265_p13 = pnand %p2263_p8, %p2223_p12  ;;  %p2272_p7 = por %p2271_p5, %p2270_p3 }
  0x38   : > { %p2266_p0 = pneg %p2265_p13 }
  0x3a   : > { %p2273_p9 = pnand %p2272_p7, %p2266_p0 }
  0x3c   : > { %2276 = shalt.err (!%p2273_p9)
}
  0x3d   : > { %s2383_s12 = smov 64   ;;  %s2384_s13 = smov 4  }
  0x3e   : > { %1949 = dma.hbm_to_vmem [thread:$0]  (!%p2468_p10), %s3218_s3, 4096, %s2472_s6, [#allocation6], %s2383_s12, %s2383_s12, %s2384_s13  }
  0x3f   : > { %s2525_s16 = sadd.s32 1, %s2377_s21   ;;  %s29_s23 = sadd.s32 1, %s2373_s20 }
  0x40   : > { %s26_s17 = ssub.s32 %s2377_s21, %s2525_s16  ;;  %p36_p11 = scmp.ne.s32.totalorder %s2373_s20, %s2369_s19 }
  0x41   : > { %p27_p12 = scmp.eq.s32.totalorder %s26_s17, 0  ;;  %p37_p1 = scmp.eq.s32.totalorder %s2377_s21, 0 }
  0x42   : > { %p3228_p4 = scmp.eq.s32.totalorder %s2441_s22, 3  ;;  %p1960_p8 = scmp.lt.s32.totalorder %s2377_s21, 4 }
  0x43   : > { %s2534_s27 = scalar_select %p27_p12, %s2373_s20, %s29_s23  }
  0x44   : > { %p38_p2 = por %p37_p1, %p36_p11  ;;  %p2538_p6 = por %p3228_p4, %p36_p11 }
  0x45   : > { %s208_s30 = sand.u32 1, %s2373_s20   ;;  %s1801_s6 = sshll.u32 %s2377_s21, 10 }
  0x46   : > { %s1715_s7 = sshll.u32 %s208_s30, 6  ;;  %s2548_s10 = scalar_lea.hbm %s3215_s0, %s1801_s6 }
  0x47   : > { %s212_s11 = scalar_lea.vmem [#allocation2], %s1715_s7  ;;  %p2552_p10 = pnand %p1960_p8, %p38_p2 }
  0x48   : > { %s219_s28 = sshll.u32 %s212_s11, 4  ;;  %s2556_s15 = scalar_lea.sflag [#allocation3], %s208_s30  ;;  %s2550_s28 = int_to_ptr.vmem [resolvable:$true] %s219_s28 }
  0x49   : > { %s2277_s17 = scalar_lea.hbm %s2548_s10, 1024  ;;  %p2279_p0 = pneg %p2552_p10 }
  0x4a   : > { %p2278_p13 = scmp.ne.s32.totalorder %s2548_s10, %s2277_s17  ;;  %s2282_s6 = scalar_lea.hbm %s3215_s0, 4096 }
  0x4b   : > { %p2283_p7 = scmp.lt.u32.totalorder %s2548_s10, %s3215_s0  ;;  %p2284_p9 = scmp.lt.u32.totalorder %s2282_s6, %s2277_s17 }
  0x4c   : > { %p2280_p3 = pnand %p2279_p0, %p2278_p13  ;;  %p2286_p11 = scmp.lt.u32.totalorder %s2277_s17, %s2548_s10 }
  0x4d   : > { %p2285_p12 = por %p2284_p9, %p2283_p7 }
  0x4e   : > { %p2281_p5 = pneg %p2280_p3 }
  0x4f   : > { %p2287_p1 = por %p2286_p11, %p2285_p12 }
  0x51   : > { %p2288_p2 = pnand %p2287_p1, %p2281_p5 }
  0x53   : > { %2291 = shalt.err (!%p2288_p2)
}
  0x54   : > { %s2292_s30 = scalar_lea.vmem %s2550_s28, 1024  ;;  %s2385_s11 = smov [#allocation2]  }
  0x55   : > { %p2293_p4 = scmp.ne.s32.totalorder %s2550_s28, %s2292_s30  ;;  %s2297_s23 = sshll.u32 %s2385_s11, 4  ;;  %s2298_s23 = int_to_ptr.vmem [resolvable:$false] %s2297_s23 }
  0x56   : > { %s2299_s7 = scalar_lea.vmem %s2298_s23, 2048  ;;  %p2300_p3 = scmp.lt.s32.totalorder %s2550_s28, %s2298_s23 }
  0x57   : > { %p2295_p8 = pnand %p2293_p4, %p2279_p0  ;;  %p2301_p7 = scmp.lt.s32.totalorder %s2299_s7, %s2292_s30 }
  0x59   : > { %p2296_p13 = pneg %p2295_p8  ;;  %p2302_p9 = por %p2301_p7, %p2300_p3 }
  0x5b   : > { %p2303_p12 = pnand %p2302_p9, %p2296_p13 }
  0x5d   : > { %2306 = shalt.err (!%p2303_p12)
}
  0x5e   : > { %1953 = dma.hbm_to_vmem [thread:$0]  (!%p2552_p10), %s2548_s10, 1024, %s2550_s28, %s2556_s15, %s2383_s12, %s2383_s12, %s2384_s13  }
  0x5f   : > { %p3231_p0 = scmp.ne.s32.totalorder %s3226_s26, 0 }
  0x61   : > { %231 = sbr.rel (%p3231_p0) target bundleno = 709 (0x2c5), region = 40 }
  0x68   : > { %s2590_s17 = sand.u32 1, %s2369_s19   ;;  %p3232_p5 = scmp.ne.s32.totalorder %s3224_s24, 0 }
  0x69   : > { %s1719_s6 = sshll.u32 %s2590_s17, 6  ;;  %s234_s8 = scalar_lea.sflag [#allocation3], %s2590_s17 }
  0x6a   : > { %s2594_s9 = scalar_lea.vmem [#allocation2], %s1719_s6 }
  0x6b   : > { %2352 = dma.done.wait (%p3232_p5), %s234_s8, 1024  }
  0x6c   : > { %2354 = vsyncadd (%p3232_p5), %s234_s8, 4294966272  ;;  %p3233_p10 = scmp.eq.s32.totalorder %s2441_s22, 0 }
  0x6e   : > { %2356 = dma.done.wait (%p3233_p10), [#allocation6], 8192   ;;  %p3234_p11 = pmov %p3233_p10 }
  0x6f   : > { %v2386_v0 = vmov 0   ;;  %v2005_v1 = vld [vmem:[#allocation5 + $0x4] ss:$16 sps:$4 sm:$0xff]   ;;  %v2007_v2 = vld [vmem:[#allocation5 + $0xc] ss:$16 sps:$4 sm:$0xff]   ;;  %s1722_s10 = sshll.u32 %s2590_s17, 7 }
  0x70   : > { %2358 = vsyncadd (%p3234_p11), [#allocation6], 4294959104  ;;  %585 = vmatprep.mubr.bf16.mxu0 %v2386_v0  ;;  %698 = vmatprep.mubr.bf16.mxu1 %v2386_v0  ;;  %v2009_v3 = vld [vmem:[#allocation5] ss:$16 sps:$4 sm:$0xff]   ;;  %v2010_v4 = vld [vmem:[#allocation5 + $0x8] ss:$16 sps:$4 sm:$0xff]  }
  0x71   : > { %553 = vmatprep.subr.bf16.mxu0 %v2005_v1  ;;  %666 = vmatprep.subr.bf16.mxu1 %v2007_v2  ;;  %v2011_v5 = vld [vmem:[#allocation5 + $0x24] ss:$16 sps:$4 sm:$0xff]   ;;  %v2013_v6 = vld [vmem:[#allocation5 + $0x2c] ss:$16 sps:$4 sm:$0xff]   ;;  %v2015_v7 = vld [vmem:[#allocation5 + $0x20] ss:$16 sps:$4 sm:$0xff]  }
  0x72   : > { %554 = vmatpush1.bf16.msra.mxu0 %v2009_v3  ;;  %667 = vmatpush1.bf16.msra.mxu1 %v2010_v4  ;;  %v2016_v8 = vld [vmem:[#allocation5 + $0x28] ss:$16 sps:$4 sm:$0xff]   ;;  %v2017_v9 = vld [vmem:[#allocation5 + $0x44] ss:$16 sps:$4 sm:$0xff]   ;;  %v2019_v10 = vld [vmem:[#allocation5 + $0x4c] ss:$16 sps:$4 sm:$0xff]  }
  0x73   : > { %555 = vmatprep.subr.bf16.mxu0 %v2011_v5  ;;  %668 = vmatprep.subr.bf16.mxu1 %v2013_v6  ;;  %v2021_v11 = vld [vmem:[#allocation5 + $0x40] ss:$16 sps:$4 sm:$0xff]   ;;  %v2022_v12 = vld [vmem:[#allocation5 + $0x48] ss:$16 sps:$4 sm:$0xff]   ;;  %v2023_v13 = vld [vmem:[#allocation5 + $0x64] ss:$16 sps:$4 sm:$0xff]  }
  0x74   : > { %v2025_v14 = vld [vmem:[#allocation5 + $0x6c] ss:$16 sps:$4 sm:$0xff]   ;;  %v2027_v15 = vld [vmem:[#allocation5 + $0x60] ss:$16 sps:$4 sm:$0xff]   ;;  %v2028_v16 = vld [vmem:[#allocation5 + $0x68] ss:$16 sps:$4 sm:$0xff]  }
  0x75   : > { %v2029_v17 = vld [vmem:[#allocation5 + $0x84] ss:$16 sps:$4 sm:$0xff]   ;;  %v2031_v18 = vld [vmem:[#allocation5 + $0x8c] ss:$16 sps:$4 sm:$0xff]   ;;  %v2033_v19 = vld [vmem:[#allocation5 + $0x80] ss:$16 sps:$4 sm:$0xff]  }
  0x76   : > { %556 = vmatpush1.bf16.msra.mxu0 %v2015_v7  ;;  %669 = vmatpush1.bf16.msra.mxu1 %v2016_v8  ;;  %v2034_v20 = vld [vmem:[#allocation5 + $0x88] ss:$16 sps:$4 sm:$0xff]   ;;  %v2035_v21 = vld [vmem:[#allocation5 + $0xa4] ss:$16 sps:$4 sm:$0xff]   ;;  %v2037_v22 = vld [vmem:[#allocation5 + $0xac] ss:$16 sps:$4 sm:$0xff]  }
  0x77   : > { %557 = vmatprep.subr.bf16.mxu0 %v2017_v9  ;;  %670 = vmatprep.subr.bf16.mxu1 %v2019_v10  ;;  %v2039_v23 = vld [vmem:[#allocation5 + $0xa0] ss:$16 sps:$4 sm:$0xff]   ;;  %v2040_v24 = vld [vmem:[#allocation5 + $0xa8] ss:$16 sps:$4 sm:$0xff]   ;;  %v2041_v25 = vld [vmem:[#allocation5 + $0xc4] ss:$16 sps:$4 sm:$0xff]   ;;  %v325_v9 = vlaneseq }
  0x78   : > { %v2043_v26 = vld [vmem:[#allocation5 + $0xcc] ss:$16 sps:$4 sm:$0xff]   ;;  %v2045_v27 = vld [vmem:[#allocation5 + $0xc0] ss:$16 sps:$4 sm:$0xff]   ;;  %v2046_v28 = vld [vmem:[#allocation5 + $0xc8] ss:$16 sps:$4 sm:$0xff]  }
  0x79   : > { %v2047_v29 = vld [vmem:[#allocation5 + $0xe4] ss:$16 sps:$4 sm:$0xff]   ;;  %v2049_v30 = vld [vmem:[#allocation5 + $0xec] ss:$16 sps:$4 sm:$0xff]   ;;  %v2051_v31 = vld [vmem:[#allocation5 + $0xe0] ss:$16 sps:$4 sm:$0xff]  }
  0x7a   : > { %558 = vmatpush1.bf16.msra.mxu0 %v2021_v11  ;;  %671 = vmatpush1.bf16.msra.mxu1 %v2022_v12  ;;  %v2052_v32 = vld [vmem:[#allocation5 + $0xe8] ss:$16 sps:$4 sm:$0xff]   ;;  %v2053_v33 = vld [vmem:[%s2594_s9] sm:$0xff]   ;;  %v2069_v43 = vld [vmem:[#allocation7 + $0x50] sm:$0xff]   ;;  %v326_v10 = vshrl.u32 %v325_v9, 7  ;;  %s3133_s28 = scalar_lea.vmem [#allocation8], %s1722_s10 }
  0x7b   : > { %559 = vmatprep.subr.bf16.mxu0 %v2023_v13  ;;  %672 = vmatprep.subr.bf16.mxu1 %v2025_v14  ;;  %v2061_v34 = vld [vmem:[#allocation7 + $0x40] sm:$0xff]   ;;  %v2065_v38 = vld [vmem:[#allocation7 + $0x48] sm:$0xff]   ;;  %v2070_v44 = vld [vmem:[#allocation7 + $0x10] sm:$0xff]   ;;  %s1802_s14 = sshll.u32 %s2441_s22, 11  ;;  %s1618_s15 = sshll.u32 %s3133_s28, 4  ;;  %s3170_s15 = int_to_ptr.vmem [resolvable:$true] %s1618_s15 }
  0x7c   : > { %v2062_v35 = vld [vmem:[#allocation7] sm:$0xff]   ;;  %v2066_v39 = vld [vmem:[#allocation7 + $0x8] sm:$0xff]   ;;  %v2071_v45 = vld [vmem:[#allocation7 + $0xd0] sm:$0xff]   ;;  %v327_v11 = vsub.s32 0, %v326_v10  ;;  %v335_v12 = vsub.s32 2, %v326_v10  ;;  %v331_v14 = vsub.s32 1, %v326_v10  ;;  %s3168_s23 = scalar_lea.hbm %s3220_s5, %s1802_s14 }
  0x7d   : > { %v2063_v36 = vld [vmem:[#allocation7 + $0xc0] sm:$0xff]   ;;  %v2067_v40 = vld [vmem:[#allocation7 + $0xc8] sm:$0xff]   ;;  %v2072_v46 = vld [vmem:[#allocation7 + $0x90] sm:$0xff]   ;;  %s1605_s22 = scalar_lea.sflag [#allocation4], %s2590_s17  ;;  %s2307_s7 = scalar_lea.vmem %s3170_s15, 2048 }
  0x7e   : > { %560 = vmatpush1.bf16.msra.mxu0 %v2027_v15  ;;  %673 = vmatpush1.bf16.msra.mxu1 %v2028_v16  ;;  %v2064_v37 = vld [vmem:[#allocation7 + $0x80] sm:$0xff]   ;;  %v2054_v41 = vld [vmem:[%s2594_s9 + $0x8] sm:$0xff]   ;;  %v2073_v47 = vld [vmem:[#allocation7 + $0x58] sm:$0xff]   ;;  %v339_v15 = vsub.s32 3, %v326_v10  ;;  %p2308_p1 = scmp.ne.s32.totalorder %s3170_s15, %s2307_s7  ;;  %s2387_s6 = smov [#allocation8]  }
  0x7f   : > { %561 = vmatprep.subr.bf16.mxu0 %v2029_v17  ;;  %674 = vmatprep.subr.bf16.mxu1 %v2031_v18  ;;  %v2068_v42 = vld [vmem:[#allocation7 + $0x88] sm:$0xff]   ;;  %v2074_v48 = vld [vmem:[#allocation7 + $0x18] sm:$0xff]   ;;  %v2077_v51 = vld [vmem:[#allocation7 + $0x60] sm:$0xff]   ;;  %s2311_s8 = sshll.u32 %s2387_s6, 4  ;;  %s2312_s8 = int_to_ptr.vmem [resolvable:$false] %s2311_s8 }
  0x80   : > { %v2075_v49 = vld [vmem:[#allocation7 + $0xd8] sm:$0xff]   ;;  %v2055_v52 = vld [vmem:[%s2594_s9 + $0x10] sm:$0xff]   ;;  %v2079_v53 = vld [vmem:[#allocation7 + $0xe0] sm:$0xff]   ;;  %p2309_p2 = pnand %p2308_p1, %p2538_p6  ;;  %p2314_p8 = scmp.lt.s32.totalorder %s3170_s15, %s2312_s8 }
  0x81   : > { %v2076_v50 = vld [vmem:[#allocation7 + $0x98] sm:$0xff]   ;;  %v2078_v54 = vld [vmem:[#allocation7 + $0x20] sm:$0xff]   ;;  %v2058_v58 = vld [vmem:[%s2594_s9 + $0x28] sm:$0xff]  }
  0x82   : > { %562 = vmatpush1.bf16.msra.mxu0 %v2033_v19  ;;  %675 = vmatpush1.bf16.msra.mxu1 %v2034_v20  ;;  %v2080_v55 = vld [vmem:[#allocation7 + $0xa0] sm:$0xff]   ;;  %v2056_v56 = vld [vmem:[%s2594_s9 + $0x18] sm:$0xff]   ;;  %v2059_v59 = vld [vmem:[%s2594_s9 + $0x30] sm:$0xff]   ;;  %p2310_p4 = pneg %p2309_p2 }
  0x83   : > { %563 = vmatprep.subr.bf16.mxu0 %v2035_v21  ;;  %676 = vmatprep.subr.bf16.mxu1 %v2037_v22  ;;  %v2057_v57 = vld [vmem:[%s2594_s9 + $0x20] sm:$0xff]   ;;  %v2060_v60 = vld [vmem:[%s2594_s9 + $0x38] sm:$0xff]   ;;  %v2081_v61 = vld [vmem:[#allocation7 + $0x68] sm:$0xff]   ;;  %s2313_s9 = scalar_lea.vmem %s2312_s8, 4096 }
  0x84   : > { %v2082_v62 = vld [vmem:[#allocation7 + $0x28] sm:$0xff]   ;;  %v2085_v2 = vld [vmem:[#allocation7 + $0x70] sm:$0xff]   ;;  %v2090_v6 = vld [vmem:[#allocation7 + $0x38] sm:$0xff]   ;;  %p2315_p13 = scmp.lt.s32.totalorder %s2313_s9, %s2307_s7 }
  0x85   : > { %v2083_v63 = vld [vmem:[#allocation7 + $0xe8] sm:$0xff]   ;;  %v2086_v3 = vld [vmem:[#allocation7 + $0x30] sm:$0xff]   ;;  %v2091_v7 = vld [vmem:[#allocation7 + $0xf8] sm:$0xff]  }
  0x86   : > { %564 = vmatpush1.bf16.msra.mxu0 %v2039_v23  ;;  %677 = vmatpush1.bf16.msra.mxu1 %v2040_v24  ;;  %v2084_v1 = vld [vmem:[#allocation7 + $0xa8] sm:$0xff]   ;;  %v2087_v4 = vld [vmem:[#allocation7 + $0xf0] sm:$0xff]   ;;  %v2092_v8 = vld [vmem:[#allocation7 + $0xb8] sm:$0xff]   ;;  %p2316_p3 = por %p2315_p13, %p2314_p8 }
  0x87   : > { %565 = vmatprep.subr.bf16.mxu0 %v2041_v25  ;;  %678 = vmatprep.subr.bf16.mxu1 %v2043_v26  ;;  %v2088_v5 = vld [vmem:[#allocation7 + $0xb0] sm:$0xff]   ;;  %v323_v13 = vld [vmem:[%s3217_s2] sm:$0xf] }
  0x88   : > { %v2631_v16 = vrot.slane %v323_v13, %v327_v11  ;;  %v2633_v17 = vrot.slane %v323_v13, %v335_v12  ;;  %v2635_v18 = vrot.slane %v323_v13, %v331_v14  ;;  %v2637_v19 = vrot.slane %v323_v13, %v339_v15  ;;  %p2317_p7 = pnand %p2316_p3, %p2310_p4 }
  0x8a   : > { %566 = vmatpush1.bf16.msra.mxu0 %v2045_v27  ;;  %679 = vmatpush1.bf16.msra.mxu1 %v2046_v28 }
  0x8b   : > { %567 = vmatprep.subr.bf16.mxu0 %v2047_v29  ;;  %680 = vmatprep.subr.bf16.mxu1 %v2049_v30 }
  0x8e   : > { %568 = vmatpush1.bf16.msra.mxu0 %v2051_v31  ;;  %681 = vmatpush1.bf16.msra.mxu1 %v2052_v32 }
  0x8f   : > { %1803 = vmatprep.subr.bf16.mxu0 %v2061_v34  ;;  %1867 = vmatprep.subr.bf16.mxu1 %v2063_v36 }
  0x91   : > { %586 = vmatmul.mubr.bf16.vlgmr.msra.gmra.mrb[0].mxu0 %v2053_v33  ;;  %699 = vmatmul.mubr.bf16.vlgmr.msra.gmra.mrb[0].mxu1 %v2053_v33 }
  0x92   : > { %595 = vmatprep.mubr.bf16.mxu0 %v2386_v0  ;;  %708 = vmatprep.mubr.bf16.mxu1 %v2386_v0 }
  0x93   : > { %1804 = vmatpush3.bf16.msra.mxu0 %v2062_v35  ;;  %1868 = vmatpush3.bf16.msra.mxu1 %v2064_v37 }
  0x94   : > { %1805 = vmatprep.subr.bf16.mxu0 %v2065_v38  ;;  %1869 = vmatprep.subr.bf16.mxu1 %v2067_v40 }
  0x97   : > { %1806 = vmatpush3.bf16.msra.mxu0 %v2066_v39  ;;  %1870 = vmatpush3.bf16.msra.mxu1 %v2068_v42 }
  0x98   : > { %1807 = vmatprep.subr.bf16.mxu0 %v2069_v43  ;;  %1871 = vmatprep.subr.bf16.mxu1 %v2071_v45 }
  0x99   : > { %596 = vmatmul.mubr.bf16.gmra.mrb[4].mxu0 %v2054_v41  ;;  %709 = vmatmul.mubr.bf16.gmra.mrb[4].mxu1 %v2054_v41 }
  0x9a   : > { %605 = vmatprep.mubr.bf16.mxu0 %v2386_v0  ;;  %718 = vmatprep.mubr.bf16.mxu1 %v2386_v0 }
  0x9b   : > { %1808 = vmatpush3.bf16.msra.mxu0 %v2070_v44  ;;  %1872 = vmatpush3.bf16.msra.mxu1 %v2072_v46 }
  0x9c   : > { %1809 = vmatprep.subr.bf16.mxu0 %v2073_v47  ;;  %1873 = vmatprep.subr.bf16.mxu1 %v2075_v49 }
  0x9f   : > { %1810 = vmatpush3.bf16.msra.mxu0 %v2074_v48  ;;  %1874 = vmatpush3.bf16.msra.mxu1 %v2076_v50 }
  0xa0   : > { %1811 = vmatprep.subr.bf16.mxu0 %v2077_v51  ;;  %1875 = vmatprep.subr.bf16.mxu1 %v2079_v53 }
  0xa1   : > { %606 = vmatmul.mubr.bf16.gmra.mrb[8].mxu0 %v2055_v52  ;;  %719 = vmatmul.mubr.bf16.gmra.mrb[8].mxu1 %v2055_v52 }
  0xa2   : > { %615 = vmatprep.mubr.bf16.mxu0 %v2386_v0  ;;  %728 = vmatprep.mubr.bf16.mxu1 %v2386_v0 }
  0xa3   : > { %1812 = vmatpush3.bf16.msra.mxu0 %v2078_v54  ;;  %1876 = vmatpush3.bf16.msra.mxu1 %v2080_v55 }
  0xa4   : > { %1813 = vmatprep.subr.bf16.mxu0 %v2081_v61  ;;  %1877 = vmatprep.subr.bf16.mxu1 %v2083_v63 }
  0xa7   : > { %1814 = vmatpush3.bf16.msra.mxu0 %v2082_v62  ;;  %1878 = vmatpush3.bf16.msra.mxu1 %v2084_v1 }
  0xa8   : > { %1815 = vmatprep.subr.bf16.mxu0 %v2085_v2  ;;  %1879 = vmatprep.subr.bf16.mxu1 %v2087_v4 }
  0xa9   : > { %616 = vmatmul.mubr.bf16.gmra.mrb[12].mxu0 %v2056_v56  ;;  %729 = vmatmul.mubr.bf16.gmra.mrb[12].mxu1 %v2056_v56 }
  0xaa   : > { %625 = vmatprep.mubr.bf16.mxu0 %v2386_v0  ;;  %738 = vmatprep.mubr.bf16.mxu1 %v2386_v0 }
  0xab   : > { %1816 = vmatpush3.bf16.msra.mxu0 %v2086_v3  ;;  %1880 = vmatpush3.bf16.msra.mxu1 %v2088_v5 }
  0xac   : > { %1881 = vmatprep.subr.bf16.mxu1 %v2091_v7 }
  0xaf   : > { %1882 = vmatpush3.bf16.msra.mxu1 %v2092_v8 }
  0xb1   : > { %626 = vmatmul.mubr.bf16.gmra.mrb[16].mxu0 %v2057_v57  ;;  %739 = vmatmul.mubr.bf16.gmra.mrb[16].mxu1 %v2057_v57 }
  0xb2   : > { %635 = vmatprep.mubr.bf16.mxu0 %v2386_v0  ;;  %748 = vmatprep.mubr.bf16.mxu1 %v2386_v0 }
  0xb9   : > { %636 = vmatmul.mubr.bf16.gmra.mrb[20].mxu0 %v2058_v58  ;;  %749 = vmatmul.mubr.bf16.gmra.mrb[20].mxu1 %v2058_v58 }
  0xba   : > { %645 = vmatprep.mubr.bf16.mxu0 %v2386_v0  ;;  %758 = vmatprep.mubr.bf16.mxu1 %v2386_v0 }
  0xc1   : > { %646 = vmatmul.mubr.bf16.gmra.mrb[24].mxu0 %v2059_v59  ;;  %759 = vmatmul.mubr.bf16.gmra.mrb[24].mxu1 %v2059_v59 }
  0xc2   : > { %655 = vmatprep.mubr.bf16.mxu0 %v2386_v0  ;;  %768 = vmatprep.mubr.bf16.mxu1 %v2386_v0  ;;  %v2089_v0 = vld [vmem:[#allocation7 + $0x78] sm:$0xff]  }
  0xc3   : > { %1817 = vmatprep.subr.bf16.mxu0 %v2089_v0 }
  0xc4   : > { %1818 = vmatpush3.bf16.msra.mxu0 %v2090_v6 }
  0xc9   : > { %656 = vmatmul.mubr.bf16.gmra.mrb[28].mxu0 %v2060_v60  ;;  %769 = vmatmul.mubr.bf16.gmra.mrb[28].mxu1 %v2060_v60 }
 0x164   : > { %v587_v20 = vpop.f32.mrb[0].mxu0  ;;  %v700_v21 = vpop.f32.mrb[0].mxu1 }
 0x165   : > { %v588_v22 = vadd.f32 %v587_v20, %v2631_v16  ;;  %v701_v23 = vadd.f32 %v700_v21, %v2633_v17  ;;  %v589_v24 = vpop.f32.mrb[1].mxu0  ;;  %v702_v25 = vpop.f32.mrb[1].mxu1 }
 0x166   : > { %v590_v26 = vadd.f32 %v589_v24, %v2635_v18  ;;  %v703_v27 = vadd.f32 %v702_v25, %v2637_v19  ;;  %v591_v28 = vpop.f32.mrb[2].mxu0  ;;  %v704_v29 = vpop.f32.mrb[2].mxu1 }
 0x167   : > { %v843_v30 = vmul.f32 0.70710677, %v588_v22  ;;  %v845_v31 = vmul.f32 0.70710677, %v701_v23  ;;  %v592_v34 = vadd.f32 %v591_v28, %v2631_v16  ;;  %v705_v35 = vadd.f32 %v704_v29, %v2633_v17  ;;  %v593_v36 = vpop.f32.mrb[3].mxu0  ;;  %v706_v37 = vpop.f32.mrb[3].mxu1 }
 0x168   : > { %v844_v32 = vmul.f32 0.70710677, %v590_v26  ;;  %v846_v33 = vmul.f32 0.70710677, %v703_v27  ;;  %v594_v38 = vadd.f32 %v593_v36, %v2635_v18  ;;  %v707_v39 = vadd.f32 %v706_v37, %v2637_v19 }
 0x169   : > { %2093 = verf.f32 %v843_v30  ;;  %v847_v40 = vmul.f32 0.70710677, %v592_v34  ;;  %v849_v41 = vmul.f32 0.70710677, %v705_v35  ;;  %v779_v58 = vmul.f32 0.5, %v588_v22 }
 0x16a   : > { %2095 = verf.f32 %v845_v31  ;;  %v848_v42 = vmul.f32 0.70710677, %v594_v38  ;;  %v850_v44 = vmul.f32 0.70710677, %v707_v39  ;;  %v781_v2 = vmul.f32 0.5, %v701_v23 }
 0x16b   : > { %2097 = verf.f32 %v844_v32  ;;  %v780_v3 = vmul.f32 0.5, %v590_v26  ;;  %v2654_v4 = vmul.f32 0.5, %v703_v27  ;;  %v783_v5 = vmul.f32 0.5, %v592_v34 }
 0x16c   : > { %2099 = verf.f32 %v846_v33  ;;  %v597_v43 = vpop.f32.mrb[4].mxu0  ;;  %v710_v46 = vpop.f32.mrb[4].mxu1  ;;  %v785_v7 = vmul.f32 0.5, %v705_v35  ;;  %v2656_v12 = vmul.f32 0.5, %v594_v38  ;;  %v2658_v13 = vmul.f32 0.5, %v707_v39 }
 0x16d   : > { %2101 = verf.f32 %v847_v40  ;;  %v598_v45 = vadd.f32 %v597_v43, %v2631_v16  ;;  %v599_v47 = vpop.f32.mrb[5].mxu0  ;;  %v711_v48 = vadd.f32 %v710_v46, %v2633_v17  ;;  %v712_v50 = vpop.f32.mrb[5].mxu1 }
 0x16e   : > { %2103 = verf.f32 %v849_v41  ;;  %v600_v49 = vadd.f32 %v599_v47, %v2635_v18  ;;  %v601_v51 = vpop.f32.mrb[6].mxu0  ;;  %v713_v53 = vadd.f32 %v712_v50, %v2637_v19  ;;  %v714_v54 = vpop.f32.mrb[6].mxu1 }
 0x16f   : > { %2105 = verf.f32 %v848_v42  ;;  %v851_v52 = vmul.f32 0.70710677, %v598_v45  ;;  %v603_v55 = vpop.f32.mrb[7].mxu0  ;;  %v853_v56 = vmul.f32 0.70710677, %v711_v48  ;;  %v716_v57 = vpop.f32.mrb[7].mxu1  ;;  %v602_v61 = vadd.f32 %v601_v51, %v2631_v16 }
 0x170   : > { %2107 = verf.f32 %v850_v44  ;;  %v852_v59 = vmul.f32 0.70710677, %v600_v49  ;;  %v854_v60 = vmul.f32 0.70710677, %v713_v53  ;;  %v715_v62 = vadd.f32 %v714_v54, %v2633_v17 }
 0x171   : > { %2109 = verf.f32 %v851_v52  ;;  %v604_v63 = vadd.f32 %v603_v55, %v2635_v18  ;;  %v855_v8 = vmul.f32 0.70710677, %v602_v61  ;;  %v717_v15 = vadd.f32 %v716_v57, %v2637_v19 }
 0x172   : > { %2111 = verf.f32 %v853_v56  ;;  %v857_v14 = vmul.f32 0.70710677, %v715_v62  ;;  %v2661_v23 = vmul.f32 0.5, %v598_v45  ;;  %v2663_v28 = vmul.f32 0.5, %v711_v48 }
 0x173   : > { %v2094_v1 = vpop.eup %2093  ;;  %2113 = verf.f32 %v852_v59  ;;  %v856_v24 = vmul.f32 0.70710677, %v604_v63  ;;  %v2665_v29 = vmul.f32 0.5, %v600_v49  ;;  %v2667_v30 = vmul.f32 0.5, %v713_v53 }
 0x174   : > { %v2096_v0 = vpop.eup %2095  ;;  %v971_v6 = vadd.f32 1.0, %v2094_v1  ;;  %v607_v9 = vpop.f32.mrb[8].mxu0  ;;  %2115 = verf.f32 %v854_v60  ;;  %v2673_v37 = vmul.f32 0.5, %v602_v61  ;;  %v858_v41 = vmul.f32 0.70710677, %v717_v15 }
 0x175   : > { %v720_v10 = vpop.f32.mrb[8].mxu1  ;;  %v2098_v11 = vpop.eup %2097  ;;  %v973_v22 = vadd.f32 1.0, %v2096_v0  ;;  %2117 = verf.f32 %v855_v8  ;;  %v608_v42 = vadd.f32 %v607_v9, %v2631_v16  ;;  %v2688_v54 = vmul.f32 0.5, %v715_v62 }
 0x176   : > { %v609_v20 = vpop.f32.mrb[9].mxu0  ;;  %v2100_v21 = vpop.eup %2099  ;;  %v2671_v34 = vmul.f32 %v971_v6, %v779_v58  ;;  %v972_v35 = vadd.f32 1.0, %v2098_v11  ;;  %2119 = verf.f32 %v857_v14  ;;  %v721_v46 = vadd.f32 %v720_v10, %v2633_v17 }
 0x177   : > { %v722_v25 = vpop.f32.mrb[9].mxu1  ;;  %v611_v26 = vpop.f32.mrb[10].mxu0  ;;  %v2678_v44 = vmul.f32 %v973_v22, %v781_v2  ;;  %2121 = verf.f32 %v856_v24  ;;  %v974_v48 = vadd.f32 1.0, %v2100_v21  ;;  %v859_v50 = vmul.f32 0.70710677, %v608_v42 }
 0x178   : > { %v2102_v27 = vpop.eup %2101  ;;  %v724_v31 = vpop.f32.mrb[10].mxu1  ;;  %v610_v51 = vadd.f32 %v609_v20, %v2635_v18  ;;  %v2690_v55 = vmul.f32 0.5, %v604_v63  ;;  %v2692_v56 = vmul.f32 0.5, %v717_v15  ;;  %v2696_v59 = vmul.f32 %v972_v35, %v780_v3 }
 0x179   : > { %v2669_v32 = vpop.f32.mrb[11].mxu0  ;;  %v2104_v33 = vpop.eup %2103  ;;  %v975_v36 = vadd.f32 1.0, %v2102_v27  ;;  %2123 = verf.f32 %v858_v41  ;;  %v861_v0 = vmul.f32 0.70710677, %v721_v46  ;;  %v2709_v3 = vmul.f32 %v974_v48, %v2654_v4 }
 0x17a   : > { %v2675_v38 = vpop.f32.mrb[11].mxu1  ;;  %v2106_v39 = vpop.eup %2105  ;;  %v977_v40 = vadd.f32 1.0, %v2104_v33  ;;  %2125 = verf.f32 %v859_v50  ;;  %v860_v9 = vmul.f32 0.70710677, %v610_v51  ;;  %v723_v10 = vadd.f32 %v722_v25, %v2637_v19 }
 0x17b   : > { %v2108_v43 = vpop.eup %2107  ;;  %v2680_v45 = vmul.f32 %v975_v36, %v783_v5  ;;  %v976_v61 = vadd.f32 1.0, %v2106_v39  ;;  %v2716_v20 = vmul.f32 0.5, %v608_v42  ;;  %2127 = verf.f32 %v861_v0 }
 0x17c   : > { %v2110_v47 = vpop.eup %2109  ;;  %v2683_v49 = vmul.f32 %v977_v40, %v785_v7  ;;  %v617_v57 = vpop.f32.mrb[12].mxu0  ;;  %v978_v5 = vadd.f32 1.0, %v2108_v43  ;;  %v612_v21 = vadd.f32 %v611_v26, %v2631_v16  ;;  %v725_v22 = vadd.f32 %v724_v31, %v2633_v17 }
 0x17d   : > { %v2112_v52 = vpop.eup %2111  ;;  %v1099_v53 = vpack.c.bf16 %v2680_v45, %v2671_v34  ;;  %v2694_v58 = vpop.f32.mrb[12].mxu1  ;;  %v979_v63 = vadd.f32 1.0, %v2110_v47  ;;  %v1040_v4 = vmul.f32 %v976_v61, %v2656_v12  ;;  %v2721_v33 = vmul.f32 0.5, %v721_v46 }
 0x17e   : > { %v1101_v60 = vpack.c.bf16 %v2683_v49, %v2678_v44  ;;  %v2700_v1 = vpop.f32.mrb[13].mxu0  ;;  %v2702_v2 = vpop.f32.mrb[13].mxu1  ;;  %v981_v8 = vadd.f32 1.0, %v2112_v52  ;;  %2129 = verf.f32 %v860_v9  ;;  %v1042_v25 = vmul.f32 %v978_v5, %v2658_v13 }
 0x17f   : > { %v2114_v62 = vpop.eup %2113  ;;  %v2704_v6 = vpop.f32.mrb[14].mxu0  ;;  %v2725_v35 = vmul.f32 %v979_v63, %v2661_v23  ;;  %v862_v36 = vmul.f32 0.70710677, %v723_v10  ;;  %v863_v39 = vmul.f32 0.70710677, %v612_v21  ;;  %v2730_v31 = vmul.f32 0.5, %v610_v51 }
 0x180   : > { %v2706_v7 = vpop.f32.mrb[14].mxu1  ;;  %v2712_v11 = vpop.f32.mrb[15].mxu0  ;;  %v980_v27 = vadd.f32 1.0, %v2114_v62  ;;  %v2728_v41 = vmul.f32 %v981_v8, %v2663_v28  ;;  %v865_v42 = vmul.f32 0.70710677, %v725_v22  ;;  %v614_v46 = vadd.f32 %v2669_v32, %v2635_v18 }
 0x181   : > { %v2714_v14 = vpop.f32.mrb[15].mxu1  ;;  %v2116_v15 = vpop.eup %2115  ;;  %2131 = verf.f32 %v862_v36  ;;  %v727_v13 = vadd.f32 %v2675_v38, %v2637_v19  ;;  %v2743_v48 = vmul.f32 0.5, %v723_v10  ;;  %v618_v50 = vadd.f32 %v617_v57, %v2631_v16 }
 0x182   : > { %v2118_v24 = vpop.eup %2117  ;;  %v982_v26 = vadd.f32 1.0, %v2116_v15  ;;  %v2741_v28 = vmul.f32 %v980_v27, %v2665_v29  ;;  %2133 = verf.f32 %v863_v39  ;;  %v2750_v61 = vmul.f32 0.5, %v612_v21 }
 0x183   : > { %v2120_v40 = vpop.eup %2119  ;;  %v983_v43 = vadd.f32 1.0, %v2118_v24  ;;  %2135 = verf.f32 %v865_v42  ;;  %v864_v38 = vmul.f32 0.70710677, %v614_v46  ;;  %v866_v8 = vmul.f32 0.70710677, %v727_v13 }
 0x184   : > { %v2122_v12 = vpop.eup %2121  ;;  %v2736_v23 = vpop.f32.mrb[16].mxu0  ;;  %v985_v32 = vadd.f32 1.0, %v2120_v40  ;;  %v2757_v63 = vmul.f32 %v982_v26, %v2667_v30  ;;  %v867_v57 = vmul.f32 0.70710677, %v618_v50  ;;  %v731_v21 = vadd.f32 %v2694_v58, %v2633_v17 }
 0x185   : > { %v2738_v47 = vpop.f32.mrb[16].mxu1  ;;  %v2746_v51 = vpop.f32.mrb[17].mxu0  ;;  %v984_v0 = vadd.f32 1.0, %v2122_v12  ;;  %v2762_v15 = vmul.f32 %v983_v43, %v2673_v37  ;;  %2137 = verf.f32 %v864_v38  ;;  %v620_v24 = vadd.f32 %v2700_v1, %v2635_v18 }
 0x186   : > { %v2748_v52 = vpop.f32.mrb[17].mxu1  ;;  %v2752_v62 = vpop.f32.mrb[18].mxu0  ;;  %2139 = verf.f32 %v866_v8  ;;  %v733_v30 = vadd.f32 %v2702_v2, %v2637_v19  ;;  %v1100_v36 = vpack.c.bf16 %v1040_v4, %v2696_v59  ;;  %v1102_v39 = vpack.c.bf16 %v1042_v25, %v2709_v3 }
 0x187   : > { %v2754_v5 = vpop.f32.mrb[18].mxu1  ;;  %v2124_v29 = vpop.eup %2123  ;;  %v2775_v37 = vmul.f32 %v985_v32, %v2688_v54  ;;  %v2777_v42 = vmul.f32 0.5, %v725_v22  ;;  %v869_v58 = vmul.f32 0.70710677, %v731_v21  ;;  %v2780_v1 = vmul.f32 %v984_v0, %v2690_v55 }
 0x188   : > { %v2759_v9 = vpop.f32.mrb[19].mxu0  ;;  %v2126_v10 = vpop.eup %2125  ;;  %v986_v26 = vadd.f32 1.0, %v2124_v29  ;;  %2141 = verf.f32 %v867_v57  ;;  %v868_v38 = vmul.f32 0.70710677, %v620_v24  ;;  %1426 = vmatprep.mubr.bf16.mxu0 %v1100_v36  ;;  %1523 = vmatprep.mubr.bf16.mxu1 %v1102_v39  ;;  %v2782_v59 = vmul.f32 0.5, %v614_v46 }
 0x189   : > { %v2768_v27 = vpop.f32.mrb[19].mxu1  ;;  %v2128_v40 = vpop.eup %2127  ;;  %v987_v43 = vadd.f32 1.0, %v2126_v10  ;;  %v2784_v2 = vmul.f32 0.5, %v727_v13  ;;  %v870_v3 = vmul.f32 0.70710677, %v733_v30  ;;  %v622_v54 = vadd.f32 %v2704_v6, %v2631_v16  ;;  %1427 = vmatmul.mubr.bf16.vlgmr.msra.gmra.mrb[32].mxu0 %v1099_v53  ;;  %1524 = vmatmul.mubr.bf16.vlgmr.msra.gmra.mrb[32].mxu1 %v1101_v60 }
 0x18a   : > { %v2130_v12 = vpop.eup %2129  ;;  %v989_v4 = vadd.f32 1.0, %v2128_v40  ;;  %2143 = verf.f32 %v869_v58  ;;  %v735_v25 = vadd.f32 %v2706_v7, %v2633_v17  ;;  %v624_v6 = vadd.f32 %v2712_v11, %v2635_v18 }
 0x18b   : > { %v2132_v45 = vpop.eup %2131  ;;  %v2807_v44 = vmul.f32 %v986_v26, %v2692_v56  ;;  %v988_v49 = vadd.f32 1.0, %v2130_v12  ;;  %2145 = verf.f32 %v868_v38  ;;  %v871_v53 = vmul.f32 0.70710677, %v622_v54 }
 0x18c   : > { %v2794_v55 = vpop.f32.mrb[20].mxu0  ;;  %v2796_v22 = vpop.f32.mrb[20].mxu1  ;;  %v2814_v7 = vmul.f32 %v987_v43, %v2716_v20  ;;  %v2816_v11 = vmul.f32 0.5, %v618_v50  ;;  %2147 = verf.f32 %v870_v3  ;;  %v873_v29 = vmul.f32 0.70710677, %v735_v25 }
 0x18d   : > { %v2802_v46 = vpop.f32.mrb[21].mxu0  ;;  %v2804_v34 = vpop.f32.mrb[21].mxu1  ;;  %v2820_v56 = vmul.f32 0.5, %v731_v21  ;;  %v2822_v57 = vmul.f32 0.5, %v620_v24  ;;  %v872_v10 = vmul.f32 0.70710677, %v624_v6  ;;  %v737_v36 = vadd.f32 %v2714_v14, %v2637_v19 }
 0x18e   : > { %v2809_v60 = vpop.f32.mrb[22].mxu0  ;;  %v2811_v13 = vpop.f32.mrb[22].mxu1  ;;  %v2829_v20 = vmul.f32 %v989_v4, %v2721_v33  ;;  %v2831_v50 = vmul.f32 0.5, %v733_v30  ;;  %2149 = verf.f32 %v871_v53  ;;  %v628_v40 = vadd.f32 %v2736_v23, %v2631_v16 }
 0x18f   : > { %v2134_v32 = vpop.eup %2133  ;;  %v2818_v0 = vpop.f32.mrb[23].mxu0  ;;  %v2836_v21 = vmul.f32 %v988_v49, %v2730_v31  ;;  %v990_v24 = vadd.f32 1.0, %v2132_v45  ;;  %2151 = verf.f32 %v873_v29  ;;  %v874_v58 = vmul.f32 0.70710677, %v737_v36 }
 0x190   : > { %v2136_v8 = vpop.eup %2135  ;;  %v2826_v39 = vpop.f32.mrb[23].mxu1  ;;  %v991_v14 = vadd.f32 1.0, %v2134_v32  ;;  %2153 = verf.f32 %v872_v10  ;;  %v875_v38 = vmul.f32 0.70710677, %v628_v40  ;;  %v741_v30 = vadd.f32 %v2738_v47, %v2633_v17 }
 0x191   : > { %v2138_v26 = vpop.eup %2137  ;;  %v993_v43 = vadd.f32 1.0, %v2136_v8  ;;  %2155 = verf.f32 %v874_v58  ;;  %v630_v23 = vadd.f32 %v2746_v51, %v2635_v18  ;;  %v2846_v49 = vmul.f32 0.5, %v622_v54 }
 0x192   : > { %v2140_v12 = vpop.eup %2139  ;;  %v992_v33 = vadd.f32 1.0, %v2138_v26  ;;  %2157 = verf.f32 %v875_v38  ;;  %v743_v53 = vadd.f32 %v2748_v52, %v2637_v19  ;;  %v2855_v47 = vmul.f32 %v990_v24, %v2743_v48 }
 0x193   : > { %v2142_v4 = vpop.eup %2141  ;;  %v994_v45 = vadd.f32 1.0, %v2140_v12  ;;  %v2857_v51 = vmul.f32 0.5, %v735_v25  ;;  %v2859_v8 = vmul.f32 0.5, %v624_v6  ;;  %v877_v10 = vmul.f32 0.70710677, %v741_v30 }
 0x194   : > { %v2842_v3 = vpop.f32.mrb[24].mxu0  ;;  %v2844_v31 = vpop.f32.mrb[24].mxu1  ;;  %v2866_v12 = vmul.f32 %v991_v14, %v2750_v61  ;;  %v2869_v52 = vmul.f32 %v993_v43, %v2777_v42  ;;  %v2871_v38 = vmul.f32 0.5, %v737_v36  ;;  %v2873_v48 = vmul.f32 0.5, %v628_v40 }
 0x195   : > { %v2850_v32 = vpop.f32.mrb[25].mxu0  ;;  %v2852_v29 = vpop.f32.mrb[25].mxu1  ;;  %v1104_v61 = vpack.c.bf16 %v2780_v1, %v2741_v28  ;;  %v2885_v42 = vmul.f32 %v994_v45, %v2784_v2  ;;  %2159 = verf.f32 %v877_v10  ;;  %v878_v36 = vmul.f32 0.70710677, %v743_v53 }
 0x196   : > { %3235 = vst [vmem:[#allocation12_spill] sm:$0xff] %v2852_v29  ;;  %v2861_v26 = vpop.f32.mrb[26].mxu0  ;;  %v2863_v54 = vpop.f32.mrb[26].mxu1  ;;  %v876_v29 = vmul.f32 0.70710677, %v630_v23  ;;  %v1106_v40 = vpack.c.bf16 %v2807_v44, %v2757_v63  ;;  %v1103_v2 = vpack.c.bf16 %v2762_v15, %v2725_v35  ;;  %v1105_v63 = vpack.c.bf16 %v2775_v37, %v2728_v41 }
 0x197   : > { %3236 = vst [vmem:[#allocation13_spill] sm:$0xff] %v2861_v26  ;;  %3237 = vst [vmem:[#allocation14_spill] sm:$0xff] %v2863_v54  ;;  %v2144_v58 = vpop.eup %2143  ;;  %v2875_v25 = vpop.f32.mrb[27].mxu0  ;;  %v2880_v26 = vmul.f32 %v992_v33, %v2782_v59  ;;  %v995_v54 = vadd.f32 1.0, %v2142_v4  ;;  %1434 = vmatprep.mubr.bf16.mxu0 %v1104_v61  ;;  %v632_v59 = vadd.f32 %v2752_v62, %v2631_v16  ;;  %v2895_v4 = vmul.f32 0.5, %v630_v23 }
 0x198   : > { %v2877_v6 = vpop.f32.mrb[27].mxu1  ;;  %v2146_v24 = vpop.eup %2145  ;;  %v997_v43 = vadd.f32 1.0, %v2144_v58  ;;  %v745_v33 = vadd.f32 %v2754_v5, %v2633_v17  ;;  %1531 = vmatprep.mubr.bf16.mxu1 %v1106_v40  ;;  %2161 = verf.f32 %v876_v29  ;;  %v2906_v58 = vmul.f32 0.5, %v743_v53  ;;  %1435 = vmatmul.mubr.bf16.gmra.mrb[36].mxu0 %v1103_v2 }
 0x199   : > { %3238 = vst [vmem:[#allocation15_spill] sm:$0xff] %v2877_v6  ;;  %v2148_v14 = vpop.eup %2147  ;;  %v2889_v6 = vmul.f32 0.5, %v741_v30  ;;  %v996_v1 = vadd.f32 1.0, %v2146_v24  ;;  %v2902_v30 = vmul.f32 %v995_v54, %v2816_v11  ;;  %v879_v62 = vmul.f32 0.70710677, %v632_v59  ;;  %1532 = vmatmul.mubr.bf16.gmra.mrb[36].mxu1 %v1105_v63 }
 0x19a   : > { %v2150_v28 = vpop.eup %2149  ;;  %v998_v45 = vadd.f32 1.0, %v2148_v14  ;;  %2163 = verf.f32 %v878_v36  ;;  %v881_v23 = vmul.f32 0.70710677, %v745_v33  ;;  %v634_v35 = vadd.f32 %v2759_v9, %v2635_v18 }
 0x19b   : > { %v2152_v44 = vpop.eup %2151  ;;  %v2915_v11 = vmul.f32 %v997_v43, %v2820_v56  ;;  %2165 = verf.f32 %v879_v62  ;;  %v747_v53 = vadd.f32 %v2768_v27, %v2637_v19  ;;  %v638_v29 = vadd.f32 %v2794_v55, %v2631_v16 }
 0x19c   : > { %v2904_v10 = vpop.f32.mrb[28].mxu0  ;;  %v2154_v5 = vpop.eup %2153  ;;  %v2926_v61 = vmul.f32 %v996_v1, %v2822_v57  ;;  %v999_v14 = vadd.f32 1.0, %v2150_v28  ;;  %v1001_v36 = vadd.f32 1.0, %v2152_v44  ;;  %2167 = verf.f32 %v881_v23 }
 0x19d   : > { %v2910_v41 = vpop.f32.mrb[28].mxu1  ;;  %v2912_v15 = vpop.f32.mrb[29].mxu0  ;;  %v2933_v27 = vmul.f32 %v998_v45, %v2831_v50  ;;  %v1000_v43 = vadd.f32 1.0, %v2154_v5  ;;  %v880_v55 = vmul.f32 0.70710677, %v634_v35  ;;  %v751_v57 = vadd.f32 %v2796_v22, %v2633_v17 }
 0x19e   : > { %v2156_v37 = vpop.eup %2155  ;;  %v2921_v54 = vpop.f32.mrb[29].mxu1  ;;  %v882_v2 = vmul.f32 0.70710677, %v747_v53  ;;  %v883_v1 = vmul.f32 0.70710677, %v638_v29  ;;  %v640_v44 = vadd.f32 %v2802_v46, %v2635_v18  ;;  %v753_v50 = vadd.f32 %v2804_v34, %v2637_v19 }
 0x19f   : > { %v2923_v24 = vpop.f32.mrb[30].mxu0  ;;  %v2158_v9 = vpop.eup %2157  ;;  %v1002_v63 = vadd.f32 1.0, %v2156_v37  ;;  %2169 = verf.f32 %v880_v55  ;;  %v2946_v5 = vmul.f32 %v999_v14, %v2846_v49  ;;  %v817_v23 = vmul.f32 0.5, %v745_v33 }
 0x1a0   : > { %3239 = vst [vmem:[#allocation16_spill] sm:$0xff] %v2923_v24  ;;  %v2928_v56 = vpop.f32.mrb[30].mxu1  ;;  %v2930_v40 = vpop.f32.mrb[31].mxu0  ;;  %v1003_v62 = vadd.f32 1.0, %v2158_v9  ;;  %v2935_v24 = vmul.f32 0.5, %v632_v59  ;;  %v2949_v59 = vmul.f32 %v1001_v36, %v2857_v51  ;;  %v2952_v22 = vmul.f32 %v1000_v43, %v2859_v8 }
 0x1a1   : > { %v2939_v28 = vpop.f32.mrb[31].mxu1  ;;  %v2160_v45 = vpop.eup %2159  ;;  %v885_v37 = vmul.f32 0.70710677, %v751_v57  ;;  %v2954_v9 = vmul.f32 0.5, %v634_v35  ;;  %2171 = verf.f32 %v882_v2  ;;  %v884_v55 = vmul.f32 0.70710677, %v640_v44 }
 0x1a2   : > { %v2957_v46 = vmul.f32 %v1002_v63, %v2871_v38  ;;  %v2960_v34 = vmul.f32 %v1003_v62, %v2873_v48  ;;  %v2962_v49 = vmul.f32 0.5, %v747_v53  ;;  %v2964_v14 = vmul.f32 0.5, %v638_v29  ;;  %v2162_v51 = vpop.eup %2161 }
 0x1a3   : > { %v1005_v33 = vadd.f32 1.0, %v2160_v45  ;;  %2173 = verf.f32 %v883_v1  ;;  %v886_v36 = vmul.f32 0.70710677, %v753_v50  ;;  %v1108_v8 = vpack.c.bf16 %v2880_v26, %v2836_v21 }
 0x1a4   : > { %v2164_v35 = vpop.eup %2163  ;;  %2175 = verf.f32 %v885_v37  ;;  %v1110_v38 = vpack.c.bf16 %v2885_v42, %v2855_v47  ;;  %v642_v48 = vadd.f32 %v2809_v60, %v2631_v16  ;;  %v755_v53 = vadd.f32 %v2811_v13, %v2633_v17 }
 0x1a5   : > { %v2166_v29 = vpop.eup %2165  ;;  %2177 = verf.f32 %v884_v55  ;;  %1442 = vmatprep.mubr.bf16.mxu0 %v1108_v8  ;;  %v1107_v43 = vpack.c.bf16 %v2866_v12, %v2814_v7  ;;  %v1109_v21 = vpack.c.bf16 %v2869_v52, %v2829_v20  ;;  %v644_v26 = vadd.f32 %v2818_v0, %v2635_v18 }
 0x1a6   : > { %v2168_v2 = vpop.eup %2167  ;;  %v1004_v47 = vadd.f32 1.0, %v2162_v51  ;;  %v2980_v42 = vmul.f32 0.5, %v751_v57  ;;  %2179 = verf.f32 %v886_v36  ;;  %1539 = vmatprep.mubr.bf16.mxu1 %v1110_v38  ;;  %v887_v60 = vmul.f32 0.70710677, %v642_v48 }
 0x1a7   : > { %v1006_v13 = vadd.f32 1.0, %v2164_v35  ;;  %v2982_v63 = vmul.f32 0.5, %v640_v44  ;;  %v889_v62 = vmul.f32 0.70710677, %v755_v53  ;;  %1443 = vmatmul.mubr.bf16.gmra.mrb[40].mxu0 %v1107_v43  ;;  %1540 = vmatmul.mubr.bf16.gmra.mrb[40].mxu1 %v1109_v21  ;;  %v888_v7 = vmul.f32 0.70710677, %v644_v26 }
 0x1a8   : > { %v2985_v12 = vmul.f32 %v1005_v33, %v2889_v6  ;;  %2181 = verf.f32 %v887_v60  ;;  %v757_v0 = vadd.f32 %v2826_v39, %v2637_v19  ;;  %v648_v20 = vadd.f32 %v2842_v3, %v2631_v16 }
 0x1a9   : > { %v2170_v52 = vpop.eup %2169  ;;  %v1007_v57 = vadd.f32 1.0, %v2166_v29  ;;  %v1009_v1 = vadd.f32 1.0, %v2168_v2  ;;  %2183 = verf.f32 %v889_v62  ;;  %v761_v44 = vadd.f32 %v2844_v31, %v2633_v17  ;;  %v3240_v2 = vld [vmem:[#allocation12_spill] sm:$0xff]  ;;  %v3241_v62 = vld [vmem:[#allocation13_spill] sm:$0xff] }
 0x1aa   : > { %v2993_v45 = vmul.f32 0.5, %v753_v50  ;;  %2185 = verf.f32 %v888_v7  ;;  %v890_v37 = vmul.f32 0.70710677, %v757_v0  ;;  %v650_v6 = vadd.f32 %v2850_v32, %v2635_v18 }
 0x1ab   : > { %v2172_v55 = vpop.eup %2171  ;;  %v2998_v39 = vmul.f32 %v1004_v47, %v2895_v4  ;;  %v3001_v3 = vmul.f32 %v1006_v13, %v2906_v58  ;;  %v3003_v51 = vmul.f32 0.5, %v642_v48  ;;  %v891_v33 = vmul.f32 0.70710677, %v648_v20 }
 0x1ac   : > { %v1008_v36 = vadd.f32 1.0, %v2170_v52  ;;  %v3005_v8 = vmul.f32 0.5, %v755_v53  ;;  %2187 = verf.f32 %v890_v37  ;;  %v893_v31 = vmul.f32 0.70710677, %v761_v44  ;;  %v3242_v52 = vld [vmem:[#allocation14_spill] sm:$0xff] }
 0x1ad   : > { %v2174_v50 = vpop.eup %2173  ;;  %v3008_v35 = vmul.f32 %v1007_v57, %v2935_v24  ;;  %v3010_v32 = vmul.f32 %v1009_v1, %v817_v23  ;;  %v3012_v38 = vmul.f32 0.5, %v644_v26  ;;  %2189 = verf.f32 %v891_v33 }
 0x1ae   : > { %v2176_v4 = vpop.eup %2175  ;;  %v1010_v58 = vadd.f32 1.0, %v2172_v55  ;;  %v3014_v29 = vmul.f32 0.5, %v757_v0  ;;  %v3016_v48 = vmul.f32 0.5, %v648_v20  ;;  %v892_v43 = vmul.f32 0.70710677, %v650_v6 }
 0x1af   : > { %v2178_v53 = vpop.eup %2177  ;;  %v3018_v21 = vmul.f32 0.5, %v761_v44  ;;  %v763_v47 = vadd.f32 %v3240_v2, %v2637_v19  ;;  %v1112_v24 = vpack.c.bf16 %v2952_v22, %v2926_v61  ;;  %v1114_v23 = vpack.c.bf16 %v2957_v46, %v2933_v27 }
 0x1b0   : > { %v2180_v26 = vpop.eup %2179  ;;  %v3027_v60 = vmul.f32 %v1008_v36, %v2954_v9  ;;  %v1011_v13 = vadd.f32 1.0, %v2174_v50  ;;  %2191 = verf.f32 %v893_v31  ;;  %v652_v7 = vadd.f32 %v3241_v62, %v2631_v16 }
 0x1b1   : > { %v1013_v0 = vadd.f32 1.0, %v2176_v4  ;;  %v894_v20 = vmul.f32 0.70710677, %v763_v47  ;;  %1450 = vmatprep.mubr.bf16.mxu0 %v1112_v24  ;;  %1547 = vmatprep.mubr.bf16.mxu1 %v1114_v23  ;;  %v765_v57 = vadd.f32 %v3242_v52, %v2633_v17  ;;  %v1111_v61 = vpack.c.bf16 %v2946_v5, %v2902_v30  ;;  %v3243_v5 = vld [vmem:[#allocation15_spill] sm:$0xff] }
 0x1b2   : > { %v2182_v27 = vpop.eup %2181  ;;  %v1012_v22 = vadd.f32 1.0, %v2178_v53  ;;  %2193 = verf.f32 %v892_v43  ;;  %v895_v9 = vmul.f32 0.70710677, %v652_v7  ;;  %v1113_v46 = vpack.c.bf16 %v2949_v59, %v2915_v11 }
 0x1b3   : > { %v2184_v1 = vpop.eup %2183  ;;  %v1074_v44 = vmul.f32 %v1010_v58, %v2962_v49  ;;  %v1014_v37 = vadd.f32 1.0, %v2180_v26  ;;  %2195 = verf.f32 %v894_v20  ;;  %v897_v55 = vmul.f32 0.70710677, %v765_v57  ;;  %1451 = vmatmul.mubr.bf16.gmra.mrb[44].mxu0 %v1111_v61 }
 0x1b4   : > { %v2186_v33 = vpop.eup %2185  ;;  %v3038_v36 = vmul.f32 0.5, %v650_v6  ;;  %2197 = verf.f32 %v895_v9  ;;  %1548 = vmatmul.mubr.bf16.gmra.mrb[44].mxu1 %v1113_v46  ;;  %v654_v30 = vadd.f32 %v2875_v25, %v2635_v18  ;;  %v767_v31 = vadd.f32 %v3243_v5, %v2637_v19 }
 0x1b5   : > { %v3045_v11 = vmul.f32 %v1011_v13, %v2964_v14  ;;  %v3048_v59 = vmul.f32 %v1013_v0, %v2980_v42  ;;  %2199 = verf.f32 %v897_v55  ;;  %v3052_v49 = vadd.f32 %v2904_v10, %v2631_v16 }
 0x1b6   : > { %v2188_v6 = vpop.eup %2187  ;;  %v3055_v50 = vmul.f32 %v1012_v22, %v2982_v63  ;;  %v1015_v4 = vadd.f32 1.0, %v2182_v27  ;;  %v1017_v25 = vadd.f32 1.0, %v2184_v1  ;;  %v896_v58 = vmul.f32 0.70710677, %v654_v30 }
 0x1b7   : > { %v2190_v43 = vpop.eup %2189  ;;  %v3058_v53 = vmul.f32 %v1014_v37, %v2993_v45  ;;  %v1016_v14 = vadd.f32 1.0, %v2186_v33  ;;  %v3060_v2 = vmul.f32 0.5, %v763_v47  ;;  %v898_v42 = vmul.f32 0.70710677, %v767_v31 }
 0x1b8   : > { %v1018_v24 = vadd.f32 1.0, %v2188_v6  ;;  %v831_v23 = vmul.f32 0.5, %v652_v7  ;;  %2201 = verf.f32 %v896_v58  ;;  %v3064_v10 = vadd.f32 %v2910_v41, %v2633_v17 }
 0x1b9   : > { %v833_v63 = vmul.f32 0.5, %v765_v57  ;;  %2203 = verf.f32 %v898_v42  ;;  %v899_v26 = vmul.f32 0.70710677, %v3052_v49  ;;  %v3069_v13 = vadd.f32 %v2912_v15, %v2635_v18 }
 0x1ba   : > { %v2192_v45 = vpop.eup %2191  ;;  %v3072_v47 = vmul.f32 %v1015_v4, %v3003_v51  ;;  %v3075_v62 = vmul.f32 %v1017_v25, %v3005_v8  ;;  %v1019_v7 = vadd.f32 1.0, %v2190_v43  ;;  %v901_v0 = vmul.f32 0.70710677, %v3064_v10 }
 0x1bb   : > { %v1080_v41 = vmul.f32 %v1016_v14, %v3012_v38  ;;  %v832_v20 = vmul.f32 0.5, %v654_v30  ;;  %v834_v52 = vmul.f32 0.5, %v767_v31  ;;  %v900_v57 = vmul.f32 0.70710677, %v3069_v13  ;;  %v3244_v38 = vld [vmem:[#allocation16_spill] sm:$0xff] }
 0x1bc   : > { %v2194_v61 = vpop.eup %2193  ;;  %v1082_v15 = vmul.f32 %v1018_v24, %v3014_v29  ;;  %v3083_v27 = vadd.f32 %v2921_v54, %v2637_v19  ;;  %v1116_v51 = vpack.c.bf16 %v3027_v60, %v2998_v39  ;;  %v1118_v8 = vpack.c.bf16 %v1074_v44, %v3001_v3 }
 0x1bd   : > { %v2196_v22 = vpop.eup %2195  ;;  %v1021_v9 = vadd.f32 1.0, %v2192_v45  ;;  %2205 = verf.f32 %v899_v26  ;;  %v662_v46 = vadd.f32 %v3244_v38, %v2631_v16  ;;  %v3092_v1 = vadd.f32 %v2928_v56, %v2633_v17 }
 0x1be   : > { %v2198_v29 = vpop.eup %2197  ;;  %v3095_v37 = vmul.f32 %v1019_v7, %v3016_v48  ;;  %2207 = verf.f32 %v901_v0  ;;  %v902_v54 = vmul.f32 0.70710677, %v3083_v27  ;;  %1458 = vmatprep.mubr.bf16.mxu0 %v1116_v51  ;;  %1555 = vmatprep.mubr.bf16.mxu1 %v1118_v8  ;;  %v1115_v39 = vpack.c.bf16 %v3008_v35, %v2960_v34 }
 0x1bf   : > { %v2200_v3 = vpop.eup %2199  ;;  %v1020_v60 = vadd.f32 1.0, %v2194_v61  ;;  %v1023_v44 = vadd.f32 1.0, %v2198_v29  ;;  %2209 = verf.f32 %v900_v57  ;;  %v903_v16 = vmul.f32 0.70710677, %v662_v46 }
 0x1c0   : > { %v1022_v55 = vadd.f32 1.0, %v2196_v22  ;;  %v1025_v17 = vadd.f32 1.0, %v2200_v3  ;;  %2211 = verf.f32 %v902_v54  ;;  %v905_v56 = vmul.f32 0.70710677, %v3092_v1  ;;  %1459 = vmatmul.mubr.bf16.gmra.mrb[48].mxu0 %v1115_v39 }
 0x1c1   : > { %v1087_v48 = vmul.f32 %v1023_v44, %v831_v23  ;;  %2213 = verf.f32 %v903_v16  ;;  %v1117_v33 = vpack.c.bf16 %v3010_v32, %v2985_v12  ;;  %v664_v30 = vadd.f32 %v2930_v40, %v2635_v18 }
 0x1c2   : > { %v2202_v34 = vpop.eup %2201  ;;  %v3105_v35 = vmul.f32 %v1025_v17, %v833_v63  ;;  %2215 = verf.f32 %v905_v56  ;;  %v777_v5 = vadd.f32 %v2939_v28, %v2637_v19  ;;  %v1120_v31 = vpack.c.bf16 %v1080_v41, %v3055_v50 }
 0x1c3   : > { %v2204_v6 = vpop.eup %2203  ;;  %v1085_v4 = vmul.f32 %v1021_v9, %v3018_v21  ;;  %v1024_v25 = vadd.f32 1.0, %v2202_v34  ;;  %1556 = vmatmul.mubr.bf16.gmra.mrb[48].mxu1 %v1117_v33  ;;  %v904_v58 = vmul.f32 0.70710677, %v664_v30  ;;  %v1122_v12 = vpack.c.bf16 %v1082_v15, %v3058_v53 }
 0x1c4   : > { %v1084_v32 = vmul.f32 %v1020_v60, %v3038_v36  ;;  %v1026_v18 = vadd.f32 1.0, %v2204_v6  ;;  %v906_v40 = vmul.f32 0.70710677, %v777_v5  ;;  %1466 = vmatprep.mubr.bf16.mxu0 %v1120_v31  ;;  %v1119_v43 = vpack.c.bf16 %v3072_v47, %v3045_v11 }
 0x1c5   : > { %v1086_v19 = vmul.f32 %v1022_v55, %v3060_v2  ;;  %v1088_v28 = vmul.f32 %v1024_v25, %v832_v20  ;;  %2217 = verf.f32 %v904_v58  ;;  %1563 = vmatprep.mubr.bf16.mxu1 %v1122_v12  ;;  %v1121_v21 = vpack.c.bf16 %v3075_v62, %v3048_v59 }
 0x1c6   : > { %v1090_v50 = vmul.f32 %v1026_v18, %v834_v52  ;;  %2219 = verf.f32 %v906_v40  ;;  %v1123_v53 = vpack.c.bf16 %v1087_v48, %v3095_v37  ;;  %v1125_v36 = vpack.c.bf16 %v3105_v35, %v1085_v4 }
 0x1c7   : > { %v2206_v14 = vpop.eup %2205  ;;  %v1124_v42 = vpack.c.bf16 %v1088_v28, %v1084_v32  ;;  %v835_v59 = vmul.f32 0.5, %v3052_v49  ;;  %v839_v62 = vmul.f32 0.5, %v662_v46  ;;  %v837_v0 = vmul.f32 0.5, %v3064_v10 }
 0x1c8   : > { %v2208_v24 = vpop.eup %2207  ;;  %1467 = vmatmul.mubr.bf16.gmra.mrb[52].mxu0 %v1119_v43  ;;  %v1126_v23 = vpack.c.bf16 %v1090_v50, %v1086_v19  ;;  %v1027_v63 = vadd.f32 1.0, %v2206_v14  ;;  %v841_v41 = vmul.f32 0.5, %v3092_v1  ;;  %v836_v38 = vmul.f32 0.5, %v3069_v13 }
 0x1c9   : > { %v2210_v11 = vpop.eup %2209  ;;  %1474 = vmatprep.mubr.bf16.mxu0 %v1124_v42  ;;  %v1029_v45 = vadd.f32 1.0, %v2208_v24  ;;  %v840_v29 = vmul.f32 0.5, %v664_v30  ;;  %v838_v37 = vmul.f32 0.5, %v3083_v27  ;;  %v842_v10 = vmul.f32 0.5, %v777_v5  ;;  %v3128_v27 = vld [vmem:[%s3219_s4] ss:$0 sm:$0xff] }
 0x1ca   : > { %v2212_v2 = vpop.eup %2211  ;;  %v1091_v52 = vmul.f32 %v1027_v63, %v835_v59  ;;  %v1028_v57 = vadd.f32 1.0, %v2210_v11 }
 0x1cb   : > { %v2214_v26 = vpop.eup %2213  ;;  %1564 = vmatmul.mubr.bf16.gmra.mrb[52].mxu1 %v1121_v21  ;;  %v1093_v51 = vmul.f32 %v1029_v45, %v837_v0  ;;  %v1030_v8 = vadd.f32 1.0, %v2212_v2 }
 0x1cc   : > { %v2216_v47 = vpop.eup %2215  ;;  %v1031_v7 = vadd.f32 1.0, %v2214_v26  ;;  %1571 = vmatprep.mubr.bf16.mxu1 %v1126_v23  ;;  %v1092_v39 = vmul.f32 %v1028_v57, %v836_v38 }
 0x1cd   : > { %v1033_v20 = vadd.f32 1.0, %v2216_v47  ;;  %v1094_v60 = vmul.f32 %v1030_v8, %v838_v37 }
 0x1ce   : > { %v1095_v61 = vmul.f32 %v1031_v7, %v839_v62 }
 0x1cf   : > { %v2218_v15 = vpop.eup %2217  ;;  %v1097_v22 = vmul.f32 %v1033_v20, %v841_v41 }
 0x1d0   : > { %v2220_v9 = vpop.eup %2219  ;;  %v1032_v49 = vadd.f32 1.0, %v2218_v15  ;;  %1475 = vmatmul.mubr.bf16.gmra.mrb[56].mxu0 %v1123_v53  ;;  %v1127_v46 = vpack.c.bf16 %v1095_v61, %v1091_v52 }
 0x1d1   : > { %v1034_v54 = vadd.f32 1.0, %v2220_v9  ;;  %v1129_v1 = vpack.c.bf16 %v1097_v22, %v1093_v51 }
 0x1d2   : > { %v1096_v3 = vmul.f32 %v1032_v49, %v840_v29 }
 0x1d3   : > { %v1098_v44 = vmul.f32 %v1034_v54, %v842_v10  ;;  %1572 = vmatmul.mubr.bf16.gmra.mrb[56].mxu1 %v1125_v36 }
 0x1d4   : > { %v1128_v16 = vpack.c.bf16 %v1096_v3, %v1092_v39 }
 0x1d5   : > { %v1130_v55 = vpack.c.bf16 %v1098_v44, %v1094_v60 }
 0x1d6   : > { %1482 = vmatprep.mubr.bf16.mxu0 %v1128_v16 }
 0x1d7   : > { %1579 = vmatprep.mubr.bf16.mxu1 %v1130_v55 }
 0x1d8   : > { %1483 = vmatmul.mubr.bf16.gmra.mrb[60].mxu0 %v1127_v46 }
 0x1db   : > { %1580 = vmatmul.mubr.bf16.gmra.mrb[60].mxu1 %v1129_v1 }
 0x25c   : > { %v1819_v13 = vpop.f32.mrb[32].mxu0  ;;  %v1883_v17 = vpop.f32.mrb[32].mxu1 }
 0x25d   : > { %v1820_v56 = vpop.f32.mrb[33].mxu0  ;;  %v1884_v48 = vpop.f32.mrb[33].mxu1 }
 0x25e   : > { %v1821_v33 = vadd.f32 %v1820_v56, %v1819_v13  ;;  %v1885_v30 = vadd.f32 %v1884_v48, %v1883_v17  ;;  %v1822_v34 = vpop.f32.mrb[34].mxu0  ;;  %v1886_v35 = vpop.f32.mrb[34].mxu1 }
 0x25f   : > { %v1823_v5 = vpop.f32.mrb[35].mxu0  ;;  %v1887_v31 = vpop.f32.mrb[35].mxu1 }
 0x260   : > { %v1429_v6 = vadd.f32 %v1821_v33, %v3128_v27  ;;  %v1824_v4 = vadd.f32 %v1823_v5, %v1822_v34  ;;  %v1888_v25 = vadd.f32 %v1887_v31, %v1886_v35 }
 0x262   : > { %v1526_v58 = vadd.f32 %v1885_v30, %v1429_v6  ;;  %v1432_v12 = vadd.f32 %v1824_v4, %v3128_v27 }
 0x264   : > { %1588 = vst [vmem:[%s3133_s28] sm:$0xff] %v1526_v58  ;;  %v1529_v32 = vadd.f32 %v1888_v25, %v1432_v12 }
 0x266   : > { %1589 = vst [vmem:[%s3133_s28 + $0x8] sm:$0xff] %v1529_v32 }
 0x26b   : > { %v1825_v18 = vpop.f32.mrb[36].mxu0 }
 0x26c   : > { %v1889_v40 = vpop.f32.mrb[36].mxu1  ;;  %v1826_v43 = vpop.f32.mrb[37].mxu0 }
 0x26d   : > { %v1890_v19 = vpop.f32.mrb[37].mxu1  ;;  %v1827_v28 = vadd.f32 %v1826_v43, %v1825_v18  ;;  %v1828_v50 = vpop.f32.mrb[38].mxu0 }
 0x26e   : > { %v1891_v21 = vadd.f32 %v1890_v19, %v1889_v40  ;;  %v1892_v53 = vpop.f32.mrb[38].mxu1  ;;  %v1829_v36 = vpop.f32.mrb[39].mxu0 }
 0x26f   : > { %v1893_v14 = vpop.f32.mrb[39].mxu1  ;;  %v1437_v42 = vadd.f32 %v1827_v28, %v3128_v27  ;;  %v1830_v24 = vadd.f32 %v1829_v36, %v1828_v50 }
 0x270   : > { %v1894_v23 = vadd.f32 %v1893_v14, %v1892_v53 }
 0x271   : > { %v1534_v11 = vadd.f32 %v1891_v21, %v1437_v42  ;;  %v1440_v2 = vadd.f32 %v1830_v24, %v3128_v27 }
 0x273   : > { %1590 = vst [vmem:[%s3133_s28 + $0x10] sm:$0xff] %v1534_v11  ;;  %v1537_v63 = vadd.f32 %v1894_v23, %v1440_v2 }
 0x275   : > { %1591 = vst [vmem:[%s3133_s28 + $0x18] sm:$0xff] %v1537_v63 }
 0x27a   : > { %v1831_v26 = vpop.f32.mrb[40].mxu0  ;;  %v1895_v45 = vpop.f32.mrb[40].mxu1 }
 0x27b   : > { %v1832_v47 = vpop.f32.mrb[41].mxu0  ;;  %v1896_v59 = vpop.f32.mrb[41].mxu1 }
 0x27c   : > { %v1833_v62 = vadd.f32 %v1832_v47, %v1831_v26  ;;  %v1897_v7 = vadd.f32 %v1896_v59, %v1895_v45  ;;  %v1834_v0 = vpop.f32.mrb[42].mxu0  ;;  %v1898_v41 = vpop.f32.mrb[42].mxu1 }
 0x27d   : > { %v1835_v20 = vpop.f32.mrb[43].mxu0  ;;  %v1899_v52 = vpop.f32.mrb[43].mxu1 }
 0x27e   : > { %v1445_v57 = vadd.f32 %v1833_v62, %v3128_v27  ;;  %v1836_v61 = vadd.f32 %v1835_v20, %v1834_v0  ;;  %v1900_v15 = vadd.f32 %v1899_v52, %v1898_v41 }
 0x280   : > { %v1542_v51 = vadd.f32 %v1897_v7, %v1445_v57  ;;  %v1448_v8 = vadd.f32 %v1836_v61, %v3128_v27 }
 0x282   : > { %1592 = vst [vmem:[%s3133_s28 + $0x20] sm:$0xff] %v1542_v51  ;;  %v1545_v22 = vadd.f32 %v1900_v15, %v1448_v8 }
 0x284   : > { %1593 = vst [vmem:[%s3133_s28 + $0x28] sm:$0xff] %v1545_v22 }
 0x286   : > { %v1837_v9 = vpop.f32.mrb[44].mxu0 }
 0x287   : > { %v1901_v38 = vpop.f32.mrb[44].mxu1  ;;  %v1838_v29 = vpop.f32.mrb[45].mxu0 }
 0x288   : > { %v1839_v49 = vadd.f32 %v1838_v29, %v1837_v9  ;;  %v1902_v46 = vpop.f32.mrb[45].mxu1  ;;  %v1840_v37 = vpop.f32.mrb[46].mxu0 }
 0x289   : > { %v1903_v10 = vadd.f32 %v1902_v46, %v1901_v38  ;;  %v1904_v54 = vpop.f32.mrb[46].mxu1  ;;  %v1841_v1 = vpop.f32.mrb[47].mxu0 }
 0x28a   : > { %v1453_v39 = vadd.f32 %v1839_v49, %v3128_v27  ;;  %v1842_v3 = vadd.f32 %v1841_v1, %v1840_v37  ;;  %v1905_v60 = vpop.f32.mrb[47].mxu1 }
 0x28b   : > { %v1906_v44 = vadd.f32 %v1905_v60, %v1904_v54 }
 0x28c   : > { %v1550_v16 = vadd.f32 %v1903_v10, %v1453_v39  ;;  %v1456_v55 = vadd.f32 %v1842_v3, %v3128_v27 }
 0x28e   : > { %1594 = vst [vmem:[%s3133_s28 + $0x30] sm:$0xff] %v1550_v16  ;;  %v1553_v13 = vadd.f32 %v1906_v44, %v1456_v55 }
 0x290   : > { %1595 = vst [vmem:[%s3133_s28 + $0x38] sm:$0xff] %v1553_v13 }
 0x293   : > { %v1843_v17 = vpop.f32.mrb[48].mxu0 }
 0x294   : > { %v1844_v56 = vpop.f32.mrb[49].mxu0 }
 0x295   : > { %v1845_v48 = vadd.f32 %v1844_v56, %v1843_v17  ;;  %v1846_v33 = vpop.f32.mrb[50].mxu0 }
 0x296   : > { %v1907_v30 = vpop.f32.mrb[48].mxu1  ;;  %v1847_v34 = vpop.f32.mrb[51].mxu0 }
 0x297   : > { %v1461_v35 = vadd.f32 %v1845_v48, %v3128_v27  ;;  %v1908_v5 = vpop.f32.mrb[49].mxu1  ;;  %v1848_v31 = vadd.f32 %v1847_v34, %v1846_v33 }
 0x298   : > { %v1909_v6 = vadd.f32 %v1908_v5, %v1907_v30  ;;  %v1910_v4 = vpop.f32.mrb[50].mxu1 }
 0x299   : > { %v1464_v25 = vadd.f32 %v1848_v31, %v3128_v27  ;;  %v1911_v58 = vpop.f32.mrb[51].mxu1 }
 0x29a   : > { %v1558_v12 = vadd.f32 %v1909_v6, %v1461_v35  ;;  %v1912_v32 = vadd.f32 %v1911_v58, %v1910_v4 }
 0x29b   : > { %v1849_v18 = vpop.f32.mrb[52].mxu0 }
 0x29c   : > { %1596 = vst [vmem:[%s3133_s28 + $0x40] sm:$0xff] %v1558_v12  ;;  %v1561_v40 = vadd.f32 %v1912_v32, %v1464_v25  ;;  %v1850_v43 = vpop.f32.mrb[53].mxu0 }
 0x29d   : > { %v1851_v19 = vadd.f32 %v1850_v43, %v1849_v18  ;;  %v1852_v28 = vpop.f32.mrb[54].mxu0 }
 0x29e   : > { %1597 = vst [vmem:[%s3133_s28 + $0x48] sm:$0xff] %v1561_v40  ;;  %v1913_v21 = vpop.f32.mrb[52].mxu1  ;;  %v1853_v50 = vpop.f32.mrb[55].mxu0 }
 0x29f   : > { %v1469_v53 = vadd.f32 %v1851_v19, %v3128_v27  ;;  %v1914_v36 = vpop.f32.mrb[53].mxu1  ;;  %v1854_v14 = vadd.f32 %v1853_v50, %v1852_v28 }
 0x2a0   : > { %v1915_v42 = vadd.f32 %v1914_v36, %v1913_v21  ;;  %v1916_v24 = vpop.f32.mrb[54].mxu1 }
 0x2a1   : > { %v1472_v23 = vadd.f32 %v1854_v14, %v3128_v27  ;;  %v1917_v11 = vpop.f32.mrb[55].mxu1 }
 0x2a2   : > { %v1566_v2 = vadd.f32 %v1915_v42, %v1469_v53  ;;  %v1918_v63 = vadd.f32 %v1917_v11, %v1916_v24 }
 0x2a3   : > { %v1855_v26 = vpop.f32.mrb[56].mxu0 }
 0x2a4   : > { %1598 = vst [vmem:[%s3133_s28 + $0x50] sm:$0xff] %v1566_v2  ;;  %v1569_v45 = vadd.f32 %v1918_v63, %v1472_v23  ;;  %v1856_v47 = vpop.f32.mrb[57].mxu0 }
 0x2a5   : > { %v1857_v59 = vadd.f32 %v1856_v47, %v1855_v26  ;;  %v1858_v62 = vpop.f32.mrb[58].mxu0 }
 0x2a6   : > { %1599 = vst [vmem:[%s3133_s28 + $0x58] sm:$0xff] %v1569_v45  ;;  %v1919_v7 = vpop.f32.mrb[56].mxu1  ;;  %v1859_v0 = vpop.f32.mrb[59].mxu0 }
 0x2a7   : > { %v1477_v41 = vadd.f32 %v1857_v59, %v3128_v27  ;;  %v1920_v20 = vpop.f32.mrb[57].mxu1  ;;  %v1860_v52 = vadd.f32 %v1859_v0, %v1858_v62 }
 0x2a8   : > { %v1921_v57 = vadd.f32 %v1920_v20, %v1919_v7  ;;  %v1922_v61 = vpop.f32.mrb[58].mxu1 }
 0x2a9   : > { %v1480_v15 = vadd.f32 %v1860_v52, %v3128_v27  ;;  %v1923_v51 = vpop.f32.mrb[59].mxu1 }
 0x2aa   : > { %v1574_v8 = vadd.f32 %v1921_v57, %v1477_v41  ;;  %v1924_v22 = vadd.f32 %v1923_v51, %v1922_v61 }
 0x2ab   : > { %v1861_v9 = vpop.f32.mrb[60].mxu0 }
 0x2ac   : > { %1600 = vst [vmem:[%s3133_s28 + $0x60] sm:$0xff] %v1574_v8  ;;  %v1577_v38 = vadd.f32 %v1924_v22, %v1480_v15  ;;  %v1862_v29 = vpop.f32.mrb[61].mxu0 }
 0x2ad   : > { %v1863_v49 = vadd.f32 %v1862_v29, %v1861_v9  ;;  %v1864_v46 = vpop.f32.mrb[62].mxu0 }
 0x2ae   : > { %1601 = vst [vmem:[%s3133_s28 + $0x68] sm:$0xff] %v1577_v38  ;;  %v1925_v37 = vpop.f32.mrb[60].mxu1  ;;  %v1865_v10 = vpop.f32.mrb[63].mxu0 }
 0x2af   : > { %v1485_v54 = vadd.f32 %v1863_v49, %v3128_v27  ;;  %v1926_v1 = vpop.f32.mrb[61].mxu1  ;;  %v1866_v39 = vadd.f32 %v1865_v10, %v1864_v46 }
 0x2b0   : > { %v1927_v3 = vadd.f32 %v1926_v1, %v1925_v37  ;;  %v1928_v60 = vpop.f32.mrb[62].mxu1 }
 0x2b1   : > { %v1488_v44 = vadd.f32 %v1866_v39, %v3128_v27  ;;  %v1929_v16 = vpop.f32.mrb[63].mxu1 }
 0x2b2   : > { %v1582_v55 = vadd.f32 %v1927_v3, %v1485_v54  ;;  %v1930_v13 = vadd.f32 %v1929_v16, %v1928_v60 }
 0x2b4   : > { %1602 = vst [vmem:[%s3133_s28 + $0x70] sm:$0xff] %v1582_v55  ;;  %v1585_v17 = vadd.f32 %v1930_v13, %v1488_v44 }
 0x2b6   : > { %1603 = vst [vmem:[%s3133_s28 + $0x78] sm:$0xff] %v1585_v17 }
 0x2b7   : > { %2320 = shalt.err (!%p2317_p7)
}
 0x2b8   : > { %s2321_s24 = scalar_lea.hbm %s3168_s23, 2048  ;;  %s2325_s13 = scalar_lea.hbm %s3220_s5, 8192 }
 0x2b9   : > { %p2322_p9 = scmp.ne.s32.totalorder %s3168_s23, %s2321_s24  ;;  %p2326_p5 = scmp.lt.u32.totalorder %s3168_s23, %s3220_s5 }
 0x2ba   : > { %p2327_p10 = scmp.lt.u32.totalorder %s2325_s13, %s2321_s24  ;;  %p2329_p1 = scmp.lt.u32.totalorder %s2321_s24, %s3168_s23 }
 0x2bb   : > { %p2323_p12 = pnand %p2322_p9, %p2538_p6 }
 0x2bc   : > { %p2328_p11 = por %p2327_p10, %p2326_p5 }
 0x2bd   : > { %p2324_p0 = pneg %p2323_p12 }
 0x2be   : > { %p2330_p2 = por %p2329_p1, %p2328_p11 }
 0x2c0   : > { %p2331_p4 = pnand %p2330_p2, %p2324_p0 }
 0x2c2   : > { %2334 = shalt.err (!%p2331_p4)
}
 0x2c3   : > { %s2388_s14 = smov 128   ;;  %s2389_s30 = smov 8  }
 0x2c4   : > { %1941 = dma.vmem_to_hbm [thread:$0]  (%p2538_p6), %s3170_s15, 2048, %s3168_s23, %s1605_s22, %s2388_s14, %s2388_s14, %s2389_s30  }
 0x2c5 PF: > { %p1963_p8 = scmp.ge.s32.totalorder %s2377_s21, 2  ;;  %s1633_s11 = sand.u32 1, %s2365_s18  }
 0x2c6   : > { %p3245_p13 = scmp.ne.s32.totalorder %s3225_s25, 0  ;;  %s1634_s7 = scalar_lea.sflag [#allocation4], %s1633_s11 }
 0x2c8   : > { %p1955_p3 = pnand %p1963_p8, %p3245_p13 }
 0x2ca   : > { %2360 = dma.done.wait (!%p1955_p3), %s1634_s7, 2048  }
 0x2cb   : > { %2362 = vsyncadd (!%p1955_p3), %s1634_s7, 4294965248  ;;  %p19_p7 = scmp.ge.s32.totalorder %s2525_s16, 6   ;;  %s3246_s18 = smov %s2369_s19 }
 0x2cc   : > { %s3247_s19 = smov %s2373_s20  ;;  %s3248_s20 = smov %s2534_s27 }
 0x2cd   : > { %s3249_s21 = smov %s2525_s16  ;;  %21 = sbr.rel (!%p19_p7) target bundleno = 6 (0x6), region = 93 }
 0x2d4   :  { %1639 = vsyncpa [#allocation3], 1 }
 0x2d5   :  { %1641 = vsyncpa [#allocation3 + $0x1], 1 }
 0x2d6   :  { %1642 = vsyncpa [#allocation6], 1 }
 0x2d7   :  { %1643 = vsyncpa [#allocation4], 1 }
 0x2d8   :  { %1645 = vsyncpa [#allocation4 + $0x1], 1 }

</bundles_post_ra>
